<compile_context>
chip_gen: v7x
topology: tpu7x:2x2x1
jax: 0.10.0
libtpu: 0.0.40
codegen_flags: <defaults>
</compile_context>

<pallas_src>
import functools

import jax
import jax.numpy as jnp
from jax import lax
from jax.experimental import pallas as pl
from jax.experimental.pallas import tpu as pltpu

IN_F = 500          # fc1 input features
HID = 500           # numberHiddenUnitsD
OUT_F = 2           # fc3 output features

IN_P = 512          # padded input features
HID_P = 512         # padded hidden
OUT_P = 128         # padded output (lane-dense store)

BN_EPS = 1e-5
NEG_SLOPE = 0.01    # PyTorch default for F.leaky_relu

SMALL_BATCH_MAX = 1024   # whole-batch fused path above this switches to tiled


def _round_up(n, m):
    return ((n + m - 1) // m) * m


def _leaky_relu(h):
    # valid because 0 < NEG_SLOPE < 1
    return jnp.maximum(h, NEG_SLOPE * h)


def _bn_scale_shift(s, q, gamma, beta, inv_b):
    """Fold training-mode BatchNorm1d into one scale/shift from sum/sumsq."""
    mean = s * inv_b
    var = jnp.maximum(q * inv_b - mean * mean, 0.0)   # clamp f32 cancellation
    scale = gamma * lax.rsqrt(var + BN_EPS)
    shift = beta - mean * scale
    return scale, shift


# -----------------------------------------------------------------------------
# Path 1: fused whole-batch kernel (small B)
# -----------------------------------------------------------------------------
def _fused_kernel(x_ref, w1_ref, g1_ref, be1_ref, w2_ref, g2_ref, be2_ref,
                  w3_ref, b3_ref, o_ref, xp_ref):
    # Zero only the 12 pad lanes of the staging scratch, then store real lanes.
    xp_ref[:, IN_F:] = jnp.zeros((xp_ref.shape[0], IN_P - IN_F), jnp.bfloat16)
    xp_ref[:, :IN_F] = x_ref[...].astype(jnp.bfloat16)

    inv_b = 1.0 / x_ref.shape[0]

    def bn_lrelu(h, gamma, beta):
        # sum and sum-of-squares computed together (single traversal of h)
        s = jnp.sum(h, axis=0, keepdims=True)
        q = jnp.sum(h * h, axis=0, keepdims=True)
        scale, shift = _bn_scale_shift(s, q, gamma, beta, inv_b)
        return _leaky_relu(h * scale + shift)

    # fc1 (bias cancelled by bn1) -> bn1 -> leaky_relu
    h1 = jnp.dot(xp_ref[...], w1_ref[...], preferred_element_type=jnp.float32)
    h1 = bn_lrelu(h1, g1_ref[...], be1_ref[...])

    # fc2 (bias cancelled by bn2) -> bn2 -> leaky_relu
    h2 = jnp.dot(h1.astype(jnp.bfloat16), w2_ref[...],
                 preferred_element_type=jnp.float32)
    h2 = bn_lrelu(h2, g2_ref[...], be2_ref[...])

    # fc3 (keeps its bias)
    out = jnp.dot(h2.astype(jnp.bfloat16), w3_ref[...],
                  preferred_element_type=jnp.float32) + b3_ref[...]
    o_ref[...] = out.astype(o_ref.dtype)


@jax.jit
def _fused_forward(x, params):
    B = x.shape[0]
    (w1, g1, be1, w2, g2, be2, w3, b3) = params
    ins = (x, w1, g1, be1, w2, g2, be2, w3, b3)

    def full(shape):
        return pl.BlockSpec(shape, lambda i: (0,) * len(shape))

    out = pl.pallas_call(
        _fused_kernel,
        grid=(1,),
        in_specs=[full(a.shape) for a in ins],
        out_specs=full((B, OUT_P)),
        out_shape=jax.ShapeDtypeStruct((B, OUT_P), jnp.float32),
        scratch_shapes=[pltpu.VMEM((B, IN_P), jnp.bfloat16)],
    )(*ins)
    return out[:, :OUT_F]


# -----------------------------------------------------------------------------
# Path 2: batch-tiled two-pass-BN pipeline (large B)
# -----------------------------------------------------------------------------
def _pass1_kernel(x_ref, w_ref, h_ref, s_ref, q_ref, xp_ref):
    @pl.when(pl.program_id(0) == 0)
    def _():
        s_ref[...] = jnp.zeros_like(s_ref)
        q_ref[...] = jnp.zeros_like(q_ref)
        # Pad lanes zeroed once; scratch persists across grid steps.
        xp_ref[:, IN_F:] = jnp.zeros((xp_ref.shape[0], IN_P - IN_F),
                                     jnp.bfloat16)

    xp_ref[:, :IN_F] = x_ref[...].astype(jnp.bfloat16)
    h = jnp.dot(xp_ref[...], w_ref[...], preferred_element_type=jnp.float32)
    h_ref[...] = h
    s_ref[...] += jnp.sum(h, axis=0, keepdims=True)
    q_ref[...] += jnp.sum(h * h, axis=0, keepdims=True)


def _pass2_kernel(h_ref, s_ref, q_ref, g_ref, be_ref, w_ref,
                  h2_ref, s2_ref, q2_ref, *, inv_b, rows_valid, tb):
    @pl.when(pl.program_id(0) == 0)
    def _():
        s2_ref[...] = jnp.zeros_like(s2_ref)
        q2_ref[...] = jnp.zeros_like(q2_ref)

    scale, shift = _bn_scale_shift(s_ref[...], q_ref[...], g_ref[...],
                                   be_ref[...], inv_b)
    a = _leaky_relu(h_ref[...] * scale + shift)
    if rows_valid is not None:
        # Zero batch-padding rows so they don't pollute this layer's stats.
        row = (pl.program_id(0) * tb
               + lax.broadcasted_iota(jnp.int32, (tb, 1), 0))
        a = jnp.where(row < rows_valid, a, 0.0)

    h2 = jnp.dot(a.astype(jnp.bfloat16), w_ref[...],
                 preferred_element_type=jnp.float32)
    h2_ref[...] = h2
    s2_ref[...] += jnp.sum(h2, axis=0, keepdims=True)
    q2_ref[...] += jnp.sum(h2 * h2, axis=0, keepdims=True)


def _pass3_kernel(h_ref, s_ref, q_ref, g_ref, be_ref, w_ref, b_ref, o_ref, *,
                  inv_b):
    scale, shift = _bn_scale_shift(s_ref[...], q_ref[...], g_ref[...],
                                   be_ref[...], inv_b)
    a = _leaky_relu(h_ref[...] * scale + shift)
    out = jnp.dot(a.astype(jnp.bfloat16), w_ref[...],
                  preferred_element_type=jnp.float32) + b_ref[...]
    o_ref[...] = out.astype(o_ref.dtype)


@functools.partial(jax.jit, static_argnames=("tile_b",))
def _tiled_forward(x, params, tile_b=512):
    B = x.shape[0]
    (w1, g1, be1, w2, g2, be2, w3, b3) = params

    tb = min(tile_b, _round_up(B, 8))
    b_pad = _round_up(B, tb)
    if b_pad != B:
        x = jnp.pad(x, ((0, b_pad - B), (0, 0)))   # zero rows -> zero stats
    nchunk = b_pad // tb
    inv_b = 1.0 / B
    rows_valid = B if b_pad != B else None

    def chunk(shape):
        return pl.BlockSpec(shape, lambda i: (i, 0))

    def const(shape):
        return pl.BlockSpec(shape, lambda i: (0, 0))

    arb = pltpu.CompilerParams(dimension_semantics=("arbitrary",))
    par = pltpu.CompilerParams(dimension_semantics=("parallel",))
    stats_shape = jax.ShapeDtypeStruct((1, HID_P), jnp.float32)

    # Pass 1: h1_raw = pad(x) @ w1 ; accumulate sum / sumsq of h1.
    h1, s1, q1 = pl.pallas_call(
        _pass1_kernel,
        grid=(nchunk,),
        in_specs=[chunk((tb, IN_F)), const((IN_P, HID_P))],
        out_specs=(chunk((tb, HID_P)), const((1, HID_P)), const((1, HID_P))),
        out_shape=(jax.ShapeDtypeStruct((b_pad, HID_P), jnp.float32),
                   stats_shape, stats_shape),
        scratch_shapes=[pltpu.VMEM((tb, IN_P), jnp.bfloat16)],
        compiler_params=arb,
    )(x, w1)

    # Pass 2: bn1 + leaky_relu + fc2 ; accumulate sum / sumsq of h2.
    h2, s2, q2 = pl.pallas_call(
        functools.partial(_pass2_kernel, inv_b=inv_b, rows_valid=rows_valid,
                          tb=tb),
        grid=(nchunk,),
        in_specs=[chunk((tb, HID_P)), const((1, HID_P)), const((1, HID_P)),
                  const((1, HID_P)), const((1, HID_P)),
                  const((HID_P, HID_P))],
        out_specs=(chunk((tb, HID_P)), const((1, HID_P)), const((1, HID_P))),
        out_shape=(jax.ShapeDtypeStruct((b_pad, HID_P), jnp.float32),
                   stats_shape, stats_shape),
        compiler_params=arb,
    )(h1, s1, q1, g1, be1, w2)

    # Pass 3: bn2 + leaky_relu + fc3(+bias).  No cross-chunk state.
    out = pl.pallas_call(
        functools.partial(_pass3_kernel, inv_b=inv_b),
        grid=(nchunk,),
        in_specs=[chunk((tb, HID_P)), const((1, HID_P)), const((1, HID_P)),
                  const((1, HID_P)), const((1, HID_P)),
                  const((HID_P, OUT_P)), const((1, OUT_P))],
        out_specs=chunk((tb, OUT_P)),
        out_shape=jax.ShapeDtypeStruct((b_pad, OUT_P), jnp.float32),
        compiler_params=par,
    )(h2, s2, q2, g2, be2, w3, b3)

    return out[:B, :OUT_F]


def discriminator_forward(x, params, *, small_batch_max=SMALL_BATCH_MAX,
                          tile_b=512):
    """x: (B, 500) float32 -> (B, 2) float32."""
    if x.shape[0] <= small_batch_max:
        return _fused_forward(x, params)
    return _tiled_forward(x, params, tile_b=tile_b)


# -----------------------------------------------------------------------------
# Parameters & references
# -----------------------------------------------------------------------------
def init_params(key):
    """Deterministic init.  Weights bf16 (padded, zeros in pad region);
    BN gamma/beta and fc3 bias in f32."""
    ks = jax.random.split(key, 3)

    def linear(k, fan_in, fan_out, pad_in, pad_out):
        kw, kb = jax.random.split(k)
        bound = 1.0 / (fan_in ** 0.5)
        w = jax.random.uniform(kw, (fan_in, fan_out), jnp.float32, -bound, bound)
        b = jax.random.uniform(kb, (1, fan_out), jnp.float32, -bound, bound)
        w_p = jnp.zeros((pad_in, pad_out), jnp.float32).at[:fan_in, :fan_out].set(w)
        b_p = jnp.zeros((1, pad_out), jnp.float32).at[:, :fan_out].set(b)
        return w_p.astype(jnp.bfloat16), b_p

    w1, _b1 = linear(ks[0], IN_F, HID, IN_P, HID_P)   # b1 cancelled by bn1
    w2, _b2 = linear(ks[1], HID, HID, HID_P, HID_P)   # b2 cancelled by bn2
    w3, b3 = linear(ks[2], HID, OUT_F, HID_P, OUT_P)

    g1 = jnp.zeros((1, HID_P), jnp.float32).at[:, :HID].set(1.0)
    be1 = jnp.zeros((1, HID_P), jnp.float32)
    g2 = jnp.zeros((1, HID_P), jnp.float32).at[:, :HID].set(1.0)
    be2 = jnp.zeros((1, HID_P), jnp.float32)

    return (w1, g1, be1, w2, g2, be2, w3, b3)


def _reference_forward(x, params):
    """Pure-JAX reference mirroring the kernel's mixed precision."""
    (w1, g1, be1, w2, g2, be2, w3, b3) = params

    def mm(a, w):
        return jnp.dot(a.astype(jnp.bfloat16), w,
                       preferred_element_type=jnp.float32)

    def bn_lrelu(h, g, b):
        m = jnp.mean(h, axis=0, keepdims=True)
        v = jnp.maximum(jnp.mean(h * h, axis=0, keepdims=True) - m * m, 0.0)
        scale = g * lax.rsqrt(v + BN_EPS)
        hn = h * scale + (b - m * scale)
        return jnp.maximum(hn, NEG_SLOPE * hn)

    xp = jnp.zeros((x.shape[0], IN_P), jnp.float32).at[:, :IN_F].set(x)
    h1 = bn_lrelu(mm(xp, w1), g1, be1)
    h2 = bn_lrelu(mm(h1, w2), g2, be2)
    return (mm(h2, w3) + b3)[:, :OUT_F]


def _reference_forward_f32(x, params):
    """Full-f32, unpadded reference of the original module semantics."""
    (w1, g1, be1, w2, g2, be2, w3, b3) = params
    w1 = w1.astype(jnp.float32)[:IN_F, :HID]
    w2 = w2.astype(jnp.float32)[:HID, :HID]
    w3 = w3.astype(jnp.float32)[:HID, :OUT_F]
    b3 = b3[:, :OUT_F]
    g1, be1 = g1[:, :HID], be1[:, :HID]
    g2, be2 = g2[:, :HID], be2[:, :HID]

    def bn_lrelu(h, g, b):
        m = jnp.mean(h, axis=0, keepdims=True)
        v = jnp.mean((h - m) ** 2, axis=0, keepdims=True)
        hn = (h - m) / jnp.sqrt(v + BN_EPS) * g + b
        return jnp.where(hn >= 0, hn, NEG_SLOPE * hn)

    h1 = bn_lrelu(x @ w1, g1, be1)
    h2 = bn_lrelu(h1 @ w2, g2, be2)
    return h2 @ w3 + b3


if __name__ == "__main__":
    key = jax.random.PRNGKey(0)
    k_x, k_p, k_x2 = jax.random.split(key, 3)
    params = init_params(k_p)

    # Small batch -> fused whole-batch kernel.
    B = 8
    x = jax.random.normal(k_x, (B, IN_F), jnp.float32)
    out = jax.block_until_ready(discriminator_forward(x, params))
    assert out.shape == (B, OUT_F), out.shape

    ref = _reference_forward(x, params)
    err = float(jnp.max(jnp.abs(out - ref)))
    assert err < 5e-3, err

    ref32 = _reference_forward_f32(x, params)
    err32 = float(jnp.max(jnp.abs(out - ref32)))
    assert err32 < 0.1, err32

    # Larger batch -> batch-tiled two-pass-BN path (3 chunks + row padding).
    B2 = 300
    x2 = jax.random.normal(k_x2, (B2, IN_F), jnp.float32)
    out2 = jax.block_until_ready(
        discriminator_forward(x2, params, small_batch_max=0, tile_b=128))
    assert out2.shape == (B2, OUT_F), out2.shape

    ref2 = _reference_forward(x2, params)
    err2 = float(jnp.max(jnp.abs(out2 - ref2)))
    assert err2 < 5e-3, err2

    print("KERNEL_OK")
</pallas_src>

<mosaic_0001>
module attributes {stable_mosaic.version = 11 : i64} {
  func.func @_fused_kernel(%arg0: i32, %arg1: memref<8x500xf32, #tpu.memory_space<vmem>>, %arg2: memref<512x512xbf16, #tpu.memory_space<vmem>>, %arg3: memref<1x512xf32, #tpu.memory_space<vmem>>, %arg4: memref<1x512xf32, #tpu.memory_space<vmem>>, %arg5: memref<512x512xbf16, #tpu.memory_space<vmem>>, %arg6: memref<1x512xf32, #tpu.memory_space<vmem>>, %arg7: memref<1x512xf32, #tpu.memory_space<vmem>>, %arg8: memref<512x128xbf16, #tpu.memory_space<vmem>>, %arg9: memref<1x128xf32, #tpu.memory_space<vmem>>, %arg10: memref<8x128xf32, #tpu.memory_space<vmem>>, %arg11: memref<8x512xbf16, #tpu.memory_space<vmem>>) attributes {dimension_semantics = [#tpu.dimension_semantics<arbitrary>], iteration_bounds = array<i64: 1>, scalar_prefetch = 0 : i64, scratch_operands = 1 : i64, tpu.core_type = #tpu.core_type<tc>, window_params = [{pipeline_mode = #tpu.pipeline_mode<synchronous>, transform_indices = @transform_0, window_bounds = array<i64: 8, 500>}, {pipeline_mode = #tpu.pipeline_mode<synchronous>, transform_indices = @transform_1, window_bounds = array<i64: 512, 512>}, {pipeline_mode = #tpu.pipeline_mode<synchronous>, transform_indices = @transform_2, window_bounds = array<i64: 1, 512>}, {pipeline_mode = #tpu.pipeline_mode<synchronous>, transform_indices = @transform_3, window_bounds = array<i64: 1, 512>}, {pipeline_mode = #tpu.pipeline_mode<synchronous>, transform_indices = @transform_4, window_bounds = array<i64: 512, 512>}, {pipeline_mode = #tpu.pipeline_mode<synchronous>, transform_indices = @transform_5, window_bounds = array<i64: 1, 512>}, {pipeline_mode = #tpu.pipeline_mode<synchronous>, transform_indices = @transform_6, window_bounds = array<i64: 1, 512>}, {pipeline_mode = #tpu.pipeline_mode<synchronous>, transform_indices = @transform_7, window_bounds = array<i64: 512, 128>}, {pipeline_mode = #tpu.pipeline_mode<synchronous>, transform_indices = @transform_8, window_bounds = array<i64: 1, 128>}, {pipeline_mode = #tpu.pipeline_mode<synchronous>, transform_indices = @transform_9, window_bounds = array<i64: 8, 128>}]} {
    %cst = arith.constant 0.000000e+00 : bf16
    %0 = vector.broadcast %cst : bf16 to vector<8x12xbf16>
    %c0 = arith.constant 0 : index
    %c500 = arith.constant 500 : index
    %1 = vector.load %arg11[%c0, %c500] : memref<8x512xbf16, #tpu.memory_space<vmem>>, vector<8x12xbf16>
    tpu.vector_store %arg11[%c0, %c500], %0 {strides = array<i32>} : memref<8x512xbf16, #tpu.memory_space<vmem>>, vector<8x12xbf16>,
    %c0_0 = arith.constant 0 : index
    %c0_1 = arith.constant 0 : index
    %2 = vector.load %arg1[%c0_0, %c0_1] : memref<8x500xf32, #tpu.memory_space<vmem>>, vector<8x500xf32>
    %3 = arith.truncf %2 : vector<8x500xf32> to vector<8x500xbf16>
    %c0_2 = arith.constant 0 : index
    %c0_3 = arith.constant 0 : index
    %4 = vector.load %arg11[%c0_2, %c0_3] : memref<8x512xbf16, #tpu.memory_space<vmem>>, vector<8x500xbf16>
    tpu.vector_store %arg11[%c0_2, %c0_3], %3 {strides = array<i32>} : memref<8x512xbf16, #tpu.memory_space<vmem>>, vector<8x500xbf16>,
    %c0_4 = arith.constant 0 : index
    %c0_5 = arith.constant 0 : index
    %5 = vector.load %arg11[%c0_4, %c0_5] : memref<8x512xbf16, #tpu.memory_space<vmem>>, vector<8x512xbf16>
    %c0_6 = arith.constant 0 : index
    %c0_7 = arith.constant 0 : index
    %6 = vector.load %arg2[%c0_6, %c0_7] : memref<512x512xbf16, #tpu.memory_space<vmem>>, vector<512x512xbf16>
    %cst_8 = arith.constant dense<0.000000e+00> : vector<8x512xf32>
    %7 = tpu.matmul %5, %6, %cst_8 {dimension_numbers = #tpu.dot_dimension_numbers<[1], [0], [0], [1], [0, 0, 1, 1], [], []>} : vector<8x512xbf16>, vector<512x512xbf16>, vector<8x512xf32> -> vector<8x512xf32>
    %c0_9 = arith.constant 0 : index
    %c0_10 = arith.constant 0 : index
    %8 = vector.load %arg3[%c0_9, %c0_10] : memref<1x512xf32, #tpu.memory_space<vmem>>, vector<1x512xf32>
    %c0_11 = arith.constant 0 : index
    %c0_12 = arith.constant 0 : index
    %9 = vector.load %arg4[%c0_11, %c0_12] : memref<1x512xf32, #tpu.memory_space<vmem>>, vector<1x512xf32>
    %cst_13 = arith.constant dense<0.000000e+00> : vector<512xf32>
    %10 = vector.multi_reduction <add>, %7, %cst_13 [0] : vector<8x512xf32> to vector<512xf32>
    %11 = vector.shape_cast %10 : vector<512xf32> to vector<1x512xf32>
    %12 = arith.mulf %7, %7 : vector<8x512xf32>
    %cst_14 = arith.constant dense<0.000000e+00> : vector<512xf32>
    %13 = vector.multi_reduction <add>, %12, %cst_14 [0] : vector<8x512xf32> to vector<512xf32>
    %14 = vector.shape_cast %13 : vector<512xf32> to vector<1x512xf32>
    %cst_15 = arith.constant 1.250000e-01 : f32
    %15 = vector.broadcast %cst_15 : f32 to vector<1x512xf32>
    %16 = arith.mulf %11, %15 : vector<1x512xf32>
    %cst_16 = arith.constant 1.250000e-01 : f32
    %17 = vector.broadcast %cst_16 : f32 to vector<1x512xf32>
    %18 = arith.mulf %14, %17 : vector<1x512xf32>
    %19 = arith.mulf %16, %16 : vector<1x512xf32>
    %20 = arith.subf %18, %19 : vector<1x512xf32>
    %cst_17 = arith.constant 0.000000e+00 : f32
    %21 = vector.broadcast %cst_17 : f32 to vector<1x512xf32>
    %22 = arith.maximumf %20, %21 : vector<1x512xf32>
    %cst_18 = arith.constant 9.99999974E-6 : f32
    %23 = vector.broadcast %cst_18 : f32 to vector<1x512xf32>
    %24 = arith.addf %22, %23 : vector<1x512xf32>
    %25 = math.rsqrt %24 : vector<1x512xf32>
    %26 = arith.mulf %8, %25 : vector<1x512xf32>
    %27 = arith.mulf %16, %26 : vector<1x512xf32>
    %28 = arith.subf %9, %27 : vector<1x512xf32>
    %29 = vector.broadcast %26 : vector<1x512xf32> to vector<8x512xf32>
    %30 = arith.mulf %7, %29 : vector<8x512xf32>
    %31 = vector.broadcast %28 : vector<1x512xf32> to vector<8x512xf32>
    %32 = arith.addf %30, %31 : vector<8x512xf32>
    %cst_19 = arith.constant 0.00999999977 : f32
    %33 = vector.broadcast %cst_19 : f32 to vector<8x512xf32>
    %34 = arith.mulf %33, %32 : vector<8x512xf32>
    %35 = arith.maximumf %32, %34 : vector<8x512xf32>
    %36 = arith.truncf %35 : vector<8x512xf32> to vector<8x512xbf16>
    %c0_20 = arith.constant 0 : index
    %c0_21 = arith.constant 0 : index
    %37 = vector.load %arg5[%c0_20, %c0_21] : memref<512x512xbf16, #tpu.memory_space<vmem>>, vector<512x512xbf16>
    %cst_22 = arith.constant dense<0.000000e+00> : vector<8x512xf32>
    %38 = tpu.matmul %36, %37, %cst_22 {dimension_numbers = #tpu.dot_dimension_numbers<[1], [0], [0], [1], [0, 0, 1, 1], [], []>} : vector<8x512xbf16>, vector<512x512xbf16>, vector<8x512xf32> -> vector<8x512xf32>
    %c0_23 = arith.constant 0 : index
    %c0_24 = arith.constant 0 : index
    %39 = vector.load %arg6[%c0_23, %c0_24] : memref<1x512xf32, #tpu.memory_space<vmem>>, vector<1x512xf32>
    %c0_25 = arith.constant 0 : index
    %c0_26 = arith.constant 0 : index
    %40 = vector.load %arg7[%c0_25, %c0_26] : memref<1x512xf32, #tpu.memory_space<vmem>>, vector<1x512xf32>
    %cst_27 = arith.constant dense<0.000000e+00> : vector<512xf32>
    %41 = vector.multi_reduction <add>, %38, %cst_27 [0] : vector<8x512xf32> to vector<512xf32>
    %42 = vector.shape_cast %41 : vector<512xf32> to vector<1x512xf32>
    %43 = arith.mulf %38, %38 : vector<8x512xf32>
    %cst_28 = arith.constant dense<0.000000e+00> : vector<512xf32>
    %44 = vector.multi_reduction <add>, %43, %cst_28 [0] : vector<8x512xf32> to vector<512xf32>
    %45 = vector.shape_cast %44 : vector<512xf32> to vector<1x512xf32>
    %cst_29 = arith.constant 1.250000e-01 : f32
    %46 = vector.broadcast %cst_29 : f32 to vector<1x512xf32>
    %47 = arith.mulf %42, %46 : vector<1x512xf32>
    %cst_30 = arith.constant 1.250000e-01 : f32
    %48 = vector.broadcast %cst_30 : f32 to vector<1x512xf32>
    %49 = arith.mulf %45, %48 : vector<1x512xf32>
    %50 = arith.mulf %47, %47 : vector<1x512xf32>
    %51 = arith.subf %49, %50 : vector<1x512xf32>
    %cst_31 = arith.constant 0.000000e+00 : f32
    %52 = vector.broadcast %cst_31 : f32 to vector<1x512xf32>
    %53 = arith.maximumf %51, %52 : vector<1x512xf32>
    %cst_32 = arith.constant 9.99999974E-6 : f32
    %54 = vector.broadcast %cst_32 : f32 to vector<1x512xf32>
    %55 = arith.addf %53, %54 : vector<1x512xf32>
    %56 = math.rsqrt %55 : vector<1x512xf32>
    %57 = arith.mulf %39, %56 : vector<1x512xf32>
    %58 = arith.mulf %47, %57 : vector<1x512xf32>
    %59 = arith.subf %40, %58 : vector<1x512xf32>
    %60 = vector.broadcast %57 : vector<1x512xf32> to vector<8x512xf32>
    %61 = arith.mulf %38, %60 : vector<8x512xf32>
    %62 = vector.broadcast %59 : vector<1x512xf32> to vector<8x512xf32>
    %63 = arith.addf %61, %62 : vector<8x512xf32>
    %cst_33 = arith.constant 0.00999999977 : f32
    %64 = vector.broadcast %cst_33 : f32 to vector<8x512xf32>
    %65 = arith.mulf %64, %63 : vector<8x512xf32>
    %66 = arith.maximumf %63, %65 : vector<8x512xf32>
    %67 = arith.truncf %66 : vector<8x512xf32> to vector<8x512xbf16>
    %c0_34 = arith.constant 0 : index
    %c0_35 = arith.constant 0 : index
    %68 = vector.load %arg8[%c0_34, %c0_35] : memref<512x128xbf16, #tpu.memory_space<vmem>>, vector<512x128xbf16>
    %cst_36 = arith.constant dense<0.000000e+00> : vector<8x128xf32>
    %69 = tpu.matmul %67, %68, %cst_36 {dimension_numbers = #tpu.dot_dimension_numbers<[1], [0], [0], [1], [0, 0, 1, 1], [], []>} : vector<8x512xbf16>, vector<512x128xbf16>, vector<8x128xf32> -> vector<8x128xf32>
    %c0_37 = arith.constant 0 : index
    %c0_38 = arith.constant 0 : index
    %70 = vector.load %arg9[%c0_37, %c0_38] : memref<1x128xf32, #tpu.memory_space<vmem>>, vector<1x128xf32>
    %71 = vector.broadcast %70 : vector<1x128xf32> to vector<8x128xf32>
    %72 = arith.addf %69, %71 : vector<8x128xf32>
    %c0_39 = arith.constant 0 : index
    %c0_40 = arith.constant 0 : index
    %73 = vector.load %arg10[%c0_39, %c0_40] : memref<8x128xf32, #tpu.memory_space<vmem>>, vector<8x128xf32>
    tpu.vector_store %arg10[%c0_39, %c0_40], %72 {strides = array<i32>} : memref<8x128xf32, #tpu.memory_space<vmem>>, vector<8x128xf32>,
    return
  }
  func.func @transform_0(%arg0: i32) -> (i32, i32) {
    %c0_i32 = arith.constant 0 : i32
    %c0_i32_0 = arith.constant 0 : i32
    %c0_i32_1 = arith.constant 0 : i32
    return %c0_i32, %c0_i32_0 : i32, i32
  }
  func.func @transform_1(%arg0: i32) -> (i32, i32) {
    %c0_i32 = arith.constant 0 : i32
    %c0_i32_0 = arith.constant 0 : i32
    %c0_i32_1 = arith.constant 0 : i32
    return %c0_i32, %c0_i32_0 : i32, i32
  }
  func.func @transform_2(%arg0: i32) -> (i32, i32) {
    %c0_i32 = arith.constant 0 : i32
    %c0_i32_0 = arith.constant 0 : i32
    %c0_i32_1 = arith.constant 0 : i32
    return %c0_i32, %c0_i32_0 : i32, i32
  }
  func.func @transform_3(%arg0: i32) -> (i32, i32) {
    %c0_i32 = arith.constant 0 : i32
    %c0_i32_0 = arith.constant 0 : i32
    %c0_i32_1 = arith.constant 0 : i32
    return %c0_i32, %c0_i32_0 : i32, i32
  }
  func.func @transform_4(%arg0: i32) -> (i32, i32) {
    %c0_i32 = arith.constant 0 : i32
    %c0_i32_0 = arith.constant 0 : i32
    %c0_i32_1 = arith.constant 0 : i32
    return %c0_i32, %c0_i32_0 : i32, i32
  }
  func.func @transform_5(%arg0: i32) -> (i32, i32) {
    %c0_i32 = arith.constant 0 : i32
    %c0_i32_0 = arith.constant 0 : i32
    %c0_i32_1 = arith.constant 0 : i32
    return %c0_i32, %c0_i32_0 : i32, i32
  }
  func.func @transform_6(%arg0: i32) -> (i32, i32) {
    %c0_i32 = arith.constant 0 : i32
    %c0_i32_0 = arith.constant 0 : i32
    %c0_i32_1 = arith.constant 0 : i32
    return %c0_i32, %c0_i32_0 : i32, i32
  }
  func.func @transform_7(%arg0: i32) -> (i32, i32) {
    %c0_i32 = arith.constant 0 : i32
    %c0_i32_0 = arith.constant 0 : i32
    %c0_i32_1 = arith.constant 0 : i32
    return %c0_i32, %c0_i32_0 : i32, i32
  }
  func.func @transform_8(%arg0: i32) -> (i32, i32) {
    %c0_i32 = arith.constant 0 : i32
    %c0_i32_0 = arith.constant 0 : i32
    %c0_i32_1 = arith.constant 0 : i32
    return %c0_i32, %c0_i32_0 : i32, i32
  }
  func.func @transform_9(%arg0: i32) -> (i32, i32) {
    %c0_i32 = arith.constant 0 : i32
    %c0_i32_0 = arith.constant 0 : i32
    %c0_i32_1 = arith.constant 0 : i32
    return %c0_i32, %c0_i32_0 : i32, i32
  }
}

</mosaic_0001>

<bundles_post_ra>
// kernel: _fused_forward.1
= control target key start
LH: loop header
LB: loop body
LE: loop exit
PB: predicated region body
PF: predicated region fallthrough
CT: control target
= control target key end

     0   :  { %14 = vsyncpa [#allocation4], 0  ;;  %s3893_s0 = inlined_call_operand.hbm [shape: f32[8,500], index: 0, kind: input, shape index: {}]   ;;  %s3894_s1 = inlined_call_operand.hbm [shape: bf16[512,512], index: 1, kind: input, shape index: {}]   ;;  %s3895_s2 = inlined_call_operand.vmem [shape: f32[1,512], index: 2, kind: input, shape index: {}]   ;;  %s3896_s3 = inlined_call_operand.vmem [shape: f32[1,512], index: 3, kind: input, shape index: {}]   ;;  %s3897_s4 = inlined_call_operand.hbm [shape: bf16[512,512], index: 4, kind: input, shape index: {}]   ;;  %s3898_s5 = inlined_call_operand.vmem [shape: f32[1,512], index: 5, kind: input, shape index: {}]   ;;  %s3899_s6 = inlined_call_operand.vmem [shape: f32[1,512], index: 6, kind: input, shape index: {}]   ;;  %s3900_s7 = inlined_call_operand.hbm [shape: bf16[512,128], index: 7, kind: input, shape index: {}]   ;;  %s3901_s8 = inlined_call_operand.vmem [shape: f32[1,128], index: 8, kind: input, shape index: {}]   ;;  %s3902_s9 = inlined_call_operand.vmem [shape: f32[8,128], index: 9, kind: output, shape index: {}]  }
   0x1   :  { %15 = vsyncpa [#allocation6], 0 }
   0x2   :  { %16 = vsyncpa [#allocation9], 0  ;;  %s3657_s30 = smov [#allocation5]   ;;  %s3563_s13 = scalar_lea.hbm %s3894_s1, 16384 }
   0x3   :  { %s32_s10 = sshll.u32 %s3657_s30, 4  ;;  %p3564_p0 = scmp.ne.s32.totalorder %s3894_s1, %s3563_s13  ;;  %s33_s10 = int_to_ptr.vmem [resolvable:$true] %s32_s10 }
   0x4   :  { %p3567_p1 = scmp.lt.u32.totalorder %s3563_s13, %s3894_s1 }
   0x6   :  { %p3569_p2 = pnand %p3567_p1, %p3564_p0 }
   0x8   :  { %3572 = shalt.err (!%p3569_p2)
}
   0x9   :  { %s3573_s18 = scalar_lea.vmem %s33_s10, 16384  ;;  %p3578_p4 = scmp.lt.s32.totalorder %s33_s10, %s33_s10 }
   0xa   :  { %p3574_p3 = scmp.ne.s32.totalorder %s33_s10, %s3573_s18  ;;  %p3579_p5 = scmp.lt.s32.totalorder %s3573_s18, %s3573_s18 }
   0xc   :  { %p3580_p6 = por %p3579_p5, %p3578_p4 }
   0xe   :  { %p3581_p7 = pnand %p3580_p6, %p3574_p3 }
  0x10   :  { %3584 = shalt.err (!%p3581_p7)
}
  0x11   :  { %s3658_s19 = smov 256   ;;  %s3659_s20 = smov 16  }
  0x12   :  { %38 = dma.hbm_to_vmem [thread:$0]  %s3894_s1, 16384, %s33_s10, [#allocation6], %s3658_s19, %s3658_s19, %s3659_s20  }
  0x13   :  { %s3660_s23 = smov [#allocation3]   ;;  %s3661_s25 = smov [#allocation7]  }
  0x14   :  { %s23_s24 = sshll.u32 %s3660_s23, 4  ;;  %s48_s26 = sshll.u32 %s3661_s25, 4  ;;  %s24_s24 = int_to_ptr.vmem [resolvable:$true] %s23_s24  ;;  %s49_s26 = int_to_ptr.vmem [resolvable:$true] %s48_s26 }
  0x15   :  { %s3585_s29 = scalar_lea.hbm %s3893_s0, 512 }
  0x16   :  { %p3586_p8 = scmp.ne.s32.totalorder %s3893_s0, %s3585_s29  ;;  %p3589_p9 = scmp.lt.u32.totalorder %s3585_s29, %s3893_s0 }
  0x18   :  { %p3591_p10 = pnand %p3589_p9, %p3586_p8 }
  0x1a   :  { %3594 = shalt.err (!%p3591_p10)
}
  0x1b   :  { %s3595_s1 = scalar_lea.vmem %s24_s24, 512  ;;  %p3600_p12 = scmp.lt.s32.totalorder %s24_s24, %s24_s24 }
  0x1c   :  { %p3596_p11 = scmp.ne.s32.totalorder %s24_s24, %s3595_s1  ;;  %p3601_p13 = scmp.lt.s32.totalorder %s3595_s1, %s3595_s1 }
  0x1e   :  { %p3602_p0 = por %p3601_p13, %p3600_p12 }
  0x20   :  { %p3603_p1 = pnand %p3602_p0, %p3596_p11 }
  0x22   :  { %3606 = shalt.err (!%p3603_p1)
}
  0x23   :  { %26 = dma.hbm_to_vmem [thread:$0]  %s3893_s0, 512, %s24_s24, [#allocation4]  }
  0x24   :  { %s3607_s17 = scalar_lea.hbm %s3897_s4, 16384 }
  0x25   :  { %p3608_p2 = scmp.ne.s32.totalorder %s3897_s4, %s3607_s17  ;;  %p3611_p3 = scmp.lt.u32.totalorder %s3607_s17, %s3897_s4 }
  0x27   :  { %p3613_p4 = pnand %p3611_p3, %p3608_p2 }
  0x29   :  { %3616 = shalt.err (!%p3613_p4)
}
  0x2a   :  { %s3617_s25 = scalar_lea.vmem %s49_s26, 16384  ;;  %p3622_p6 = scmp.lt.s32.totalorder %s49_s26, %s49_s26 }
  0x2b   :  { %p3618_p5 = scmp.ne.s32.totalorder %s49_s26, %s3617_s25  ;;  %p3623_p7 = scmp.lt.s32.totalorder %s3617_s25, %s3617_s25 }
  0x2d   :  { %p3624_p8 = por %p3623_p7, %p3622_p6 }
  0x2f   :  { %p3625_p9 = pnand %p3624_p8, %p3618_p5 }
  0x31   :  { %3628 = shalt.err (!%p3625_p9)
}
  0x32   :  { %54 = dma.hbm_to_vmem [thread:$0]  %s3897_s4, 16384, %s49_s26, [#allocation6], %s3658_s19, %s3658_s19, %s3659_s20  }
  0x33   :  { %s3662_s27 = smov [#allocation8]   ;;  %s3629_s11 = scalar_lea.hbm %s3900_s7, 4096 }
  0x34   :  { %s64_s28 = sshll.u32 %s3662_s27, 4  ;;  %p3630_p10 = scmp.ne.s32.totalorder %s3900_s7, %s3629_s11  ;;  %s65_s28 = int_to_ptr.vmem [resolvable:$true] %s64_s28 }
  0x35   :  { %p3633_p11 = scmp.lt.u32.totalorder %s3629_s11, %s3900_s7 }
  0x37   :  { %p3635_p12 = pnand %p3633_p11, %p3630_p10 }
  0x39   :  { %3638 = shalt.err (!%p3635_p12)
}
  0x3a   :  { %s3639_s14 = scalar_lea.vmem %s65_s28, 4096  ;;  %p3644_p0 = scmp.lt.s32.totalorder %s65_s28, %s65_s28 }
  0x3b   :  { %p3640_p13 = scmp.ne.s32.totalorder %s65_s28, %s3639_s14  ;;  %p3645_p1 = scmp.lt.s32.totalorder %s3639_s14, %s3639_s14 }
  0x3d   :  { %p3646_p2 = por %p3645_p1, %p3644_p0 }
  0x3f   :  { %p3647_p3 = pnand %p3646_p2, %p3640_p13 }
  0x41   :  { %3650 = shalt.err (!%p3647_p3)
}
  0x42   :  { %s3663_s4 = smov 64   ;;  %s3664_s19 = smov 4  }
  0x43   :  { %70 = dma.hbm_to_vmem [thread:$0]  %s3900_s7, 4096, %s65_s28, [#allocation9], %s3663_s4, %s3663_s4, %s3664_s19  }
  0x44   :  { %3651 = dma.done.wait [#allocation4], 512  }
  0x45   :  { %3652 = vsyncadd [#allocation4], 4294966784 }
  0x46   :  { %3653 = dma.done.wait [#allocation6], 32768  }
  0x47   :  { %3654 = vsyncadd [#allocation6], 4294934528 }
  0x48   :  { %3655 = dma.done.wait [#allocation9], 4096  }
  0x49   :  { %3656 = vsyncadd [#allocation9], 4294963200  ;;  %vm86_vm0 = vcmask 1044384   ;;  %v3665_v0 = vmov 0   ;;  %v3127_v1 = vld [vmem:[#allocation5 + $0x4] ss:$16 sps:$4 sm:$0xff]  }
  0x4a   :  { %87 = vst.msk [vmem:[#allocation2 + $0xc] sm:$0xf] %vm86_vm0, %v3665_v0  ;;  %v3129_v2 = vld [vmem:[#allocation5 + $0xc] ss:$16 sps:$4 sm:$0xff]   ;;  %897 = vmatprep.subr.bf16.mxu0 %v3127_v1  ;;  %v3131_v3 = vld [vmem:[#allocation5] ss:$16 sps:$4 sm:$0xff]  }
  0x4b   :  { %v3132_v4 = vld [vmem:[#allocation5 + $0x8] ss:$16 sps:$4 sm:$0xff]   ;;  %979 = vmatprep.subr.bf16.mxu1 %v3129_v2  ;;  %v3133_v5 = vld [vmem:[#allocation5 + $0x24] ss:$16 sps:$4 sm:$0xff]   ;;  %898 = vmatpush1.bf16.msra.mxu0 %v3131_v3  ;;  %v3135_v6 = vld [vmem:[#allocation5 + $0x2c] ss:$16 sps:$4 sm:$0xff]  }
  0x4c   :  { %980 = vmatpush1.bf16.msra.mxu1 %v3132_v4  ;;  %v3137_v7 = vld [vmem:[#allocation5 + $0x20] ss:$16 sps:$4 sm:$0xff]   ;;  %899 = vmatprep.subr.bf16.mxu0 %v3133_v5  ;;  %v3138_v8 = vld [vmem:[#allocation5 + $0x28] ss:$16 sps:$4 sm:$0xff]   ;;  %v3139_v9 = vld [vmem:[#allocation5 + $0x44] ss:$16 sps:$4 sm:$0xff]  }
  0x4d   :  { %981 = vmatprep.subr.bf16.mxu1 %v3135_v6  ;;  %v3141_v10 = vld [vmem:[#allocation5 + $0x4c] ss:$16 sps:$4 sm:$0xff]   ;;  %v3143_v11 = vld [vmem:[#allocation5 + $0x40] ss:$16 sps:$4 sm:$0xff]   ;;  %v3144_v12 = vld [vmem:[#allocation5 + $0x48] ss:$16 sps:$4 sm:$0xff]  }
  0x4e   :  { %v3145_v13 = vld [vmem:[#allocation5 + $0x64] ss:$16 sps:$4 sm:$0xff]   ;;  %v3147_v14 = vld [vmem:[#allocation5 + $0x6c] ss:$16 sps:$4 sm:$0xff]   ;;  %v3149_v15 = vld [vmem:[#allocation5 + $0x60] ss:$16 sps:$4 sm:$0xff]  }
  0x4f   :  { %900 = vmatpush1.bf16.msra.mxu0 %v3137_v7  ;;  %v3150_v16 = vld [vmem:[#allocation5 + $0x68] ss:$16 sps:$4 sm:$0xff]   ;;  %v3151_v17 = vld [vmem:[#allocation5 + $0x84] ss:$16 sps:$4 sm:$0xff]   ;;  %v3153_v18 = vld [vmem:[#allocation5 + $0x8c] ss:$16 sps:$4 sm:$0xff]  }
  0x50   :  { %982 = vmatpush1.bf16.msra.mxu1 %v3138_v8  ;;  %901 = vmatprep.subr.bf16.mxu0 %v3139_v9  ;;  %v3155_v19 = vld [vmem:[#allocation5 + $0x80] ss:$16 sps:$4 sm:$0xff]   ;;  %v3156_v20 = vld [vmem:[#allocation5 + $0x88] ss:$16 sps:$4 sm:$0xff]   ;;  %v3157_v21 = vld [vmem:[#allocation5 + $0xa4] ss:$16 sps:$4 sm:$0xff]  }
  0x51   :  { %983 = vmatprep.subr.bf16.mxu1 %v3141_v10  ;;  %v3159_v22 = vld [vmem:[#allocation5 + $0xac] ss:$16 sps:$4 sm:$0xff]   ;;  %v3161_v23 = vld [vmem:[#allocation5 + $0xa0] ss:$16 sps:$4 sm:$0xff]   ;;  %v3162_v24 = vld [vmem:[#allocation5 + $0xa8] ss:$16 sps:$4 sm:$0xff]  }
  0x52   :  { %v3163_v25 = vld [vmem:[#allocation5 + $0xc4] ss:$16 sps:$4 sm:$0xff]   ;;  %v3165_v26 = vld [vmem:[#allocation5 + $0xcc] ss:$16 sps:$4 sm:$0xff]   ;;  %v3167_v27 = vld [vmem:[#allocation5 + $0xc0] ss:$16 sps:$4 sm:$0xff]  }
  0x53   :  { %902 = vmatpush1.bf16.msra.mxu0 %v3143_v11  ;;  %v3168_v28 = vld [vmem:[#allocation5 + $0xc8] ss:$16 sps:$4 sm:$0xff]   ;;  %v3169_v29 = vld [vmem:[#allocation5 + $0xe4] ss:$16 sps:$4 sm:$0xff]   ;;  %v3171_v30 = vld [vmem:[#allocation5 + $0xec] ss:$16 sps:$4 sm:$0xff]  }
  0x54   :  { %984 = vmatpush1.bf16.msra.mxu1 %v3144_v12  ;;  %903 = vmatprep.subr.bf16.mxu0 %v3145_v13  ;;  %v3173_v31 = vld [vmem:[#allocation5 + $0xe0] ss:$16 sps:$4 sm:$0xff]   ;;  %v3174_v32 = vld [vmem:[#allocation5 + $0xe8] ss:$16 sps:$4 sm:$0xff]   ;;  %v3175_v33 = vld [vmem:[#allocation5 + $0x104] ss:$16 sps:$4 sm:$0xff]  }
  0x55   :  { %985 = vmatprep.subr.bf16.mxu1 %v3147_v14  ;;  %v3177_v34 = vld [vmem:[#allocation5 + $0x10c] ss:$16 sps:$4 sm:$0xff]   ;;  %v3179_v35 = vld [vmem:[#allocation5 + $0x100] ss:$16 sps:$4 sm:$0xff]   ;;  %v3180_v36 = vld [vmem:[#allocation5 + $0x108] ss:$16 sps:$4 sm:$0xff]  }
  0x56   :  { %v3181_v37 = vld [vmem:[#allocation5 + $0x124] ss:$16 sps:$4 sm:$0xff]   ;;  %v3183_v38 = vld [vmem:[#allocation5 + $0x12c] ss:$16 sps:$4 sm:$0xff]   ;;  %v3185_v39 = vld [vmem:[#allocation5 + $0x120] ss:$16 sps:$4 sm:$0xff]  }
  0x57   :  { %904 = vmatpush1.bf16.msra.mxu0 %v3149_v15  ;;  %v3186_v40 = vld [vmem:[#allocation5 + $0x128] ss:$16 sps:$4 sm:$0xff]   ;;  %v3187_v41 = vld [vmem:[#allocation5 + $0x144] ss:$16 sps:$4 sm:$0xff]   ;;  %v3189_v42 = vld [vmem:[#allocation5 + $0x14c] ss:$16 sps:$4 sm:$0xff]  }
  0x58   :  { %986 = vmatpush1.bf16.msra.mxu1 %v3150_v16  ;;  %905 = vmatprep.subr.bf16.mxu0 %v3151_v17  ;;  %v3191_v43 = vld [vmem:[#allocation5 + $0x140] ss:$16 sps:$4 sm:$0xff]   ;;  %v3192_v44 = vld [vmem:[#allocation5 + $0x148] ss:$16 sps:$4 sm:$0xff]   ;;  %v3193_v45 = vld [vmem:[#allocation5 + $0x164] ss:$16 sps:$4 sm:$0xff]  }
  0x59   :  { %987 = vmatprep.subr.bf16.mxu1 %v3153_v18  ;;  %v3195_v46 = vld [vmem:[#allocation5 + $0x16c] ss:$16 sps:$4 sm:$0xff]   ;;  %v88_v47 = vld [vmem:[#allocation3] sm:$0xff]  ;;  %v3198_v50 = vld [vmem:[#allocation5 + $0x168] ss:$16 sps:$4 sm:$0xff]   ;;  %vm109_vm1 = vcmask 1043456  }
  0x5a   :  { %v89_v48 = vld [vmem:[#allocation3 + $0x8] sm:$0xff]  ;;  %v3197_v49 = vld [vmem:[#allocation5 + $0x160] ss:$16 sps:$4 sm:$0xff]   ;;  %v3199_v51 = vld [vmem:[#allocation5 + $0x184] ss:$16 sps:$4 sm:$0xff]   ;;  %v3562_v6 = vpack.c.bf16 %v88_v47, %v88_v47  ;;  %vm110_vm2 = vcmask 949252  }
  0x5b   :  { %906 = vmatpush1.bf16.msra.mxu0 %v3155_v19  ;;  %v3201_v52 = vld [vmem:[#allocation5 + $0x18c] ss:$16 sps:$4 sm:$0xff]   ;;  %v3561_v53 = vpack.c.bf16 %v89_v48, %v89_v48  ;;  %v3203_v54 = vld [vmem:[#allocation5 + $0x180] ss:$16 sps:$4 sm:$0xff]   ;;  %v3204_v55 = vld [vmem:[#allocation5 + $0x188] ss:$16 sps:$4 sm:$0xff]  }
  0x5c   :  { %988 = vmatpush1.bf16.msra.mxu1 %v3156_v20  ;;  %907 = vmatprep.subr.bf16.mxu0 %v3157_v21  ;;  %v3205_v56 = vld [vmem:[#allocation5 + $0x1a4] ss:$16 sps:$4 sm:$0xff]   ;;  %v3207_v57 = vld [vmem:[#allocation5 + $0x1ac] ss:$16 sps:$4 sm:$0xff]   ;;  %v3209_v58 = vld [vmem:[#allocation5 + $0x1a0] ss:$16 sps:$4 sm:$0xff]  }
  0x5d   :  { %989 = vmatprep.subr.bf16.mxu1 %v3159_v22  ;;  %929 = vmatprep.mubr.bf16.mxu0 %v3561_v53  ;;  %v3210_v59 = vld [vmem:[#allocation5 + $0x1a8] ss:$16 sps:$4 sm:$0xff]   ;;  %v3211_v60 = vld [vmem:[#allocation5 + $0x1c4] ss:$16 sps:$4 sm:$0xff]   ;;  %v3213_v61 = vld [vmem:[#allocation5 + $0x1cc] ss:$16 sps:$4 sm:$0xff]  }
  0x5e   :  { %1011 = vmatprep.mubr.bf16.mxu1 %v3561_v53  ;;  %v3215_v62 = vld [vmem:[#allocation5 + $0x1c0] ss:$16 sps:$4 sm:$0xff]   ;;  %v3216_v63 = vld [vmem:[#allocation5 + $0x1c8] ss:$16 sps:$4 sm:$0xff]   ;;  %v3217_v0 = vld [vmem:[#allocation5 + $0x1e4] ss:$16 sps:$4 sm:$0xff]  }
  0x5f   :  { %908 = vmatpush1.bf16.msra.mxu0 %v3161_v23  ;;  %v3219_v1 = vld [vmem:[#allocation5 + $0x1ec] ss:$16 sps:$4 sm:$0xff]   ;;  %v3221_v2 = vld [vmem:[#allocation5 + $0x1e0] ss:$16 sps:$4 sm:$0xff]   ;;  %v3222_v3 = vld [vmem:[#allocation5 + $0x1e8] ss:$16 sps:$4 sm:$0xff]  }
  0x60   :  { %990 = vmatpush1.bf16.msra.mxu1 %v3162_v24  ;;  %909 = vmatprep.subr.bf16.mxu0 %v3163_v25  ;;  %v3225_v4 = vld [vmem:[#allocation5 + $0x204] ss:$16 sps:$4 sm:$0xff]   ;;  %v3228_v5 = vld [vmem:[#allocation5 + $0x20c] ss:$16 sps:$4 sm:$0xff]   ;;  %v3223_v7 = vld [vmem:[#allocation5 + $0x200] ss:$16 sps:$4 sm:$0xff]  }
  0x61   :  { %991 = vmatprep.subr.bf16.mxu1 %v3165_v26  ;;  %v3226_v8 = vld [vmem:[#allocation5 + $0x208] ss:$16 sps:$4 sm:$0xff]   ;;  %v3231_v9 = vld [vmem:[#allocation5 + $0x224] ss:$16 sps:$4 sm:$0xff]   ;;  %v3234_v10 = vld [vmem:[#allocation5 + $0x22c] ss:$16 sps:$4 sm:$0xff]  }
  0x62   :  { %v3229_v11 = vld [vmem:[#allocation5 + $0x220] ss:$16 sps:$4 sm:$0xff]   ;;  %v3232_v12 = vld [vmem:[#allocation5 + $0x228] ss:$16 sps:$4 sm:$0xff]   ;;  %v3237_v13 = vld [vmem:[#allocation5 + $0x244] ss:$16 sps:$4 sm:$0xff]  }
  0x63   :  { %910 = vmatpush1.bf16.msra.mxu0 %v3167_v27  ;;  %v3240_v14 = vld [vmem:[#allocation5 + $0x24c] ss:$16 sps:$4 sm:$0xff]   ;;  %v3235_v15 = vld [vmem:[#allocation5 + $0x240] ss:$16 sps:$4 sm:$0xff]   ;;  %v3238_v16 = vld [vmem:[#allocation5 + $0x248] ss:$16 sps:$4 sm:$0xff]  }
  0x64   :  { %992 = vmatpush1.bf16.msra.mxu1 %v3168_v28  ;;  %911 = vmatprep.subr.bf16.mxu0 %v3169_v29  ;;  %v3243_v17 = vld [vmem:[#allocation5 + $0x264] ss:$16 sps:$4 sm:$0xff]   ;;  %v3246_v18 = vld [vmem:[#allocation5 + $0x26c] ss:$16 sps:$4 sm:$0xff]   ;;  %v3241_v19 = vld [vmem:[#allocation5 + $0x260] ss:$16 sps:$4 sm:$0xff]  }
  0x65   :  { %993 = vmatprep.subr.bf16.mxu1 %v3171_v30  ;;  %v3244_v20 = vld [vmem:[#allocation5 + $0x268] ss:$16 sps:$4 sm:$0xff]   ;;  %v3249_v21 = vld [vmem:[#allocation5 + $0x284] ss:$16 sps:$4 sm:$0xff]   ;;  %v3252_v22 = vld [vmem:[#allocation5 + $0x28c] ss:$16 sps:$4 sm:$0xff]  }
  0x66   :  { %v3247_v23 = vld [vmem:[#allocation5 + $0x280] ss:$16 sps:$4 sm:$0xff]   ;;  %v3250_v24 = vld [vmem:[#allocation5 + $0x288] ss:$16 sps:$4 sm:$0xff]   ;;  %v3255_v25 = vld [vmem:[#allocation5 + $0x2a4] ss:$16 sps:$4 sm:$0xff]  }
  0x67   :  { %912 = vmatpush1.bf16.msra.mxu0 %v3173_v31  ;;  %v3258_v26 = vld [vmem:[#allocation5 + $0x2ac] ss:$16 sps:$4 sm:$0xff]   ;;  %vm3771_vm3 = vmor %vm110_vm2, %vm109_vm1  ;;  %v3253_v28 = vld [vmem:[#allocation5 + $0x2a0] ss:$16 sps:$4 sm:$0xff]  }
  0x68   :  { %994 = vmatpush1.bf16.msra.mxu1 %v3174_v32  ;;  %913 = vmatprep.subr.bf16.mxu0 %v3175_v33  ;;  %v3256_v29 = vld [vmem:[#allocation5 + $0x2a8] ss:$16 sps:$4 sm:$0xff]   ;;  %v3261_v30 = vld [vmem:[#allocation5 + $0x2c4] ss:$16 sps:$4 sm:$0xff]   ;;  %v3264_v31 = vld [vmem:[#allocation5 + $0x2cc] ss:$16 sps:$4 sm:$0xff]  }
  0x69   :  { %995 = vmatprep.subr.bf16.mxu1 %v3177_v34  ;;  %v3259_v32 = vld [vmem:[#allocation5 + $0x2c0] ss:$16 sps:$4 sm:$0xff]   ;;  %v3262_v33 = vld [vmem:[#allocation5 + $0x2c8] ss:$16 sps:$4 sm:$0xff]  }
  0x6a   :  { %v90_v34 = vld [vmem:[#allocation3 + $0x10] sm:$0xff]  ;;  %v3342_v27 = vld [vmem:[#allocation7 + $0x68] ss:$16 sps:$4 sm:$0xff]  }
  0x6b   :  { %914 = vmatpush1.bf16.msra.mxu0 %v3179_v35  ;;  %v91_v35 = vld [vmem:[#allocation3 + $0x18] sm:$0xff]  ;;  %v3283_v53 = vld [vmem:[#allocation5 + $0x340] ss:$16 sps:$4 sm:$0xff]  }
  0x6c   :  { %996 = vmatpush1.bf16.msra.mxu1 %v3180_v36  ;;  %915 = vmatprep.subr.bf16.mxu0 %v3181_v37  ;;  %v3267_v36 = vld [vmem:[#allocation5 + $0x2e4] ss:$16 sps:$4 sm:$0xff]   ;;  %v3270_v37 = vld [vmem:[#allocation5 + $0x2ec] ss:$16 sps:$4 sm:$0xff]  }
  0x6d   :  { %997 = vmatprep.subr.bf16.mxu1 %v3183_v38  ;;  %v3056_v38 = vpack.c.bf16 %v91_v35, %v90_v34  ;;  %v3351_v34 = vld [vmem:[#allocation7 + $0xa0] ss:$16 sps:$4 sm:$0xff]   ;;  %v3354_v35 = vld [vmem:[#allocation7 + $0xa8] ss:$16 sps:$4 sm:$0xff]  }
  0x6f   :  { %916 = vmatpush1.bf16.msra.mxu0 %v3185_v39  ;;  %112 = vst.msk [vmem:[#allocation2 + $0x8] sm:$0xff] %vm3771_vm3, %v3056_v38  ;;  %v3265_v39 = vld [vmem:[#allocation5 + $0x2e0] ss:$16 sps:$4 sm:$0xff]  }
  0x70   :  { %998 = vmatpush1.bf16.msra.mxu1 %v3186_v40  ;;  %917 = vmatprep.subr.bf16.mxu0 %v3187_v41  ;;  %v3268_v40 = vld [vmem:[#allocation5 + $0x2e8] ss:$16 sps:$4 sm:$0xff]   ;;  %v3273_v41 = vld [vmem:[#allocation5 + $0x304] ss:$16 sps:$4 sm:$0xff]   ;;  %v3357_v38 = vld [vmem:[#allocation7 + $0xc0] ss:$16 sps:$4 sm:$0xff]  }
  0x71   :  { %999 = vmatprep.subr.bf16.mxu1 %v3189_v42  ;;  %v3276_v42 = vld [vmem:[#allocation5 + $0x30c] ss:$16 sps:$4 sm:$0xff]  }
  0x73   :  { %918 = vmatpush1.bf16.msra.mxu0 %v3191_v43  ;;  %v3271_v43 = vld [vmem:[#allocation5 + $0x300] ss:$16 sps:$4 sm:$0xff]  }
  0x74   :  { %1000 = vmatpush1.bf16.msra.mxu1 %v3192_v44  ;;  %919 = vmatprep.subr.bf16.mxu0 %v3193_v45  ;;  %v3274_v44 = vld [vmem:[#allocation5 + $0x308] ss:$16 sps:$4 sm:$0xff]   ;;  %v3279_v45 = vld [vmem:[#allocation5 + $0x324] ss:$16 sps:$4 sm:$0xff]  }
  0x75   :  { %1001 = vmatprep.subr.bf16.mxu1 %v3195_v46  ;;  %v3282_v46 = vld [vmem:[#allocation5 + $0x32c] ss:$16 sps:$4 sm:$0xff]  }
  0x76   :  { %v114_v47 = vld [vmem:[#allocation2 + $0x8] sm:$0xff] }
  0x77   :  { %920 = vmatpush1.bf16.msra.mxu0 %v3197_v49  ;;  %v2765_v48 = vcombine.high %v114_v47, %v114_v47  ;;  %v3277_v49 = vld [vmem:[#allocation5 + $0x320] ss:$16 sps:$4 sm:$0xff]  }
  0x78   :  { %1002 = vmatpush1.bf16.msra.mxu1 %v3198_v50  ;;  %921 = vmatprep.subr.bf16.mxu0 %v3199_v51  ;;  %v3280_v50 = vld [vmem:[#allocation5 + $0x328] ss:$16 sps:$4 sm:$0xff]   ;;  %v3285_v51 = vld [vmem:[#allocation5 + $0x344] ss:$16 sps:$4 sm:$0xff]  }
  0x79   :  { %1003 = vmatprep.subr.bf16.mxu1 %v3201_v52  ;;  %v3288_v52 = vld [vmem:[#allocation5 + $0x34c] ss:$16 sps:$4 sm:$0xff]  }
  0x7b   :  { %922 = vmatpush1.bf16.msra.mxu0 %v3203_v54  ;;  %v3286_v54 = vld [vmem:[#allocation5 + $0x348] ss:$16 sps:$4 sm:$0xff]  }
  0x7c   :  { %1004 = vmatpush1.bf16.msra.mxu1 %v3204_v55  ;;  %923 = vmatprep.subr.bf16.mxu0 %v3205_v56  ;;  %v3291_v55 = vld [vmem:[#allocation5 + $0x364] ss:$16 sps:$4 sm:$0xff]   ;;  %v3294_v56 = vld [vmem:[#allocation5 + $0x36c] ss:$16 sps:$4 sm:$0xff]  }
  0x7d   :  { %1005 = vmatprep.subr.bf16.mxu1 %v3207_v57  ;;  %v3289_v57 = vld [vmem:[#allocation5 + $0x360] ss:$16 sps:$4 sm:$0xff]  }
  0x7f   :  { %924 = vmatpush1.bf16.msra.mxu0 %v3209_v58  ;;  %v3292_v58 = vld [vmem:[#allocation5 + $0x368] ss:$16 sps:$4 sm:$0xff]  }
  0x80   :  { %1006 = vmatpush1.bf16.msra.mxu1 %v3210_v59  ;;  %925 = vmatprep.subr.bf16.mxu0 %v3211_v60  ;;  %v3297_v59 = vld [vmem:[#allocation5 + $0x384] ss:$16 sps:$4 sm:$0xff]   ;;  %v3300_v60 = vld [vmem:[#allocation5 + $0x38c] ss:$16 sps:$4 sm:$0xff]  }
  0x81   :  { %1007 = vmatprep.subr.bf16.mxu1 %v3213_v61  ;;  %v3295_v61 = vld [vmem:[#allocation5 + $0x380] ss:$16 sps:$4 sm:$0xff]  }
  0x83   :  { %926 = vmatpush1.bf16.msra.mxu0 %v3215_v62  ;;  %v3298_v62 = vld [vmem:[#allocation5 + $0x388] ss:$16 sps:$4 sm:$0xff]  }
  0x84   :  { %1008 = vmatpush1.bf16.msra.mxu1 %v3216_v63  ;;  %927 = vmatprep.subr.bf16.mxu0 %v3217_v0  ;;  %v3303_v63 = vld [vmem:[#allocation5 + $0x3a4] ss:$16 sps:$4 sm:$0xff]   ;;  %v3306_v0 = vld [vmem:[#allocation5 + $0x3ac] ss:$16 sps:$4 sm:$0xff]  }
  0x85   :  { %1009 = vmatprep.subr.bf16.mxu1 %v3219_v1  ;;  %v3301_v1 = vld [vmem:[#allocation5 + $0x3a0] ss:$16 sps:$4 sm:$0xff]  }
  0x87   :  { %928 = vmatpush1.bf16.msra.mxu0 %v3221_v2  ;;  %v3304_v2 = vld [vmem:[#allocation5 + $0x3a8] ss:$16 sps:$4 sm:$0xff]  }
  0x88   :  { %1010 = vmatpush1.bf16.msra.mxu1 %v3222_v3  ;;  %938 = vmatprep.subr.bf16.mxu0 %v3225_v4  ;;  %v3309_v3 = vld [vmem:[#allocation5 + $0x3c4] ss:$16 sps:$4 sm:$0xff]   ;;  %v3312_v4 = vld [vmem:[#allocation5 + $0x3cc] ss:$16 sps:$4 sm:$0xff]  }
  0x89   :  { %1020 = vmatprep.subr.bf16.mxu1 %v3228_v5  ;;  %v3307_v5 = vld [vmem:[#allocation5 + $0x3c0] ss:$16 sps:$4 sm:$0xff]  }
  0x8a   :  { %930 = vmatmul.mubr.bf16.vlgmr.msra.gmra.mrb[0].mxu0 %v3562_v6 }
  0x8b   :  { %1012 = vmatmul.mubr.bf16.vlgmr.msra.gmra.mrb[0].mxu1 %v3562_v6  ;;  %939 = vmatpush1.bf16.msra.mxu0 %v3223_v7  ;;  %v3310_v6 = vld [vmem:[#allocation5 + $0x3c8] ss:$16 sps:$4 sm:$0xff]   ;;  %v3315_v7 = vld [vmem:[#allocation5 + $0x3e4] ss:$16 sps:$4 sm:$0xff]  }
  0x8c   :  { %1021 = vmatpush1.bf16.msra.mxu1 %v3226_v8  ;;  %940 = vmatprep.subr.bf16.mxu0 %v3231_v9  ;;  %v3318_v8 = vld [vmem:[#allocation5 + $0x3ec] ss:$16 sps:$4 sm:$0xff]   ;;  %v3313_v9 = vld [vmem:[#allocation5 + $0x3e0] ss:$16 sps:$4 sm:$0xff]  }
  0x8d   :  { %1022 = vmatprep.subr.bf16.mxu1 %v3234_v10  ;;  %970 = vmatprep.mubr.bf16.mxu0 %v2765_v48  ;;  %v3316_v10 = vld [vmem:[#allocation5 + $0x3e8] ss:$16 sps:$4 sm:$0xff]  }
  0x8e   :  { %1052 = vmatprep.mubr.bf16.mxu1 %v2765_v48  ;;  %v3377_v48 = vld [vmem:[#allocation7 + $0x124] ss:$16 sps:$4 sm:$0xff]  }
  0x8f   :  { %941 = vmatpush1.bf16.msra.mxu0 %v3229_v11  ;;  %v2764_v11 = vcombine.low %v114_v47, %v114_v47  ;;  %v3372_v47 = vld [vmem:[#allocation7 + $0x108] ss:$16 sps:$4 sm:$0xff]  }
  0x90   :  { %1023 = vmatpush1.bf16.msra.mxu1 %v3232_v12  ;;  %942 = vmatprep.subr.bf16.mxu0 %v3237_v13  ;;  %v3323_v12 = vld [vmem:[#allocation7 + $0x4] ss:$16 sps:$4 sm:$0xff]   ;;  %v3326_v13 = vld [vmem:[#allocation7 + $0xc] ss:$16 sps:$4 sm:$0xff]  }
  0x91   :  { %1024 = vmatprep.subr.bf16.mxu1 %v3240_v14  ;;  %v3321_v14 = vld [vmem:[#allocation7] ss:$16 sps:$4 sm:$0xff]  }
  0x93   :  { %943 = vmatpush1.bf16.msra.mxu0 %v3235_v15  ;;  %v3324_v15 = vld [vmem:[#allocation7 + $0x8] ss:$16 sps:$4 sm:$0xff]  }
  0x94   :  { %1025 = vmatpush1.bf16.msra.mxu1 %v3238_v16  ;;  %944 = vmatprep.subr.bf16.mxu0 %v3243_v17  ;;  %v3329_v16 = vld [vmem:[#allocation7 + $0x24] ss:$16 sps:$4 sm:$0xff]   ;;  %v3332_v17 = vld [vmem:[#allocation7 + $0x2c] ss:$16 sps:$4 sm:$0xff]  }
  0x95   :  { %1026 = vmatprep.subr.bf16.mxu1 %v3246_v18  ;;  %v3327_v18 = vld [vmem:[#allocation7 + $0x20] ss:$16 sps:$4 sm:$0xff]  }
  0x97   :  { %945 = vmatpush1.bf16.msra.mxu0 %v3241_v19  ;;  %v3330_v19 = vld [vmem:[#allocation7 + $0x28] ss:$16 sps:$4 sm:$0xff]  }
  0x98   :  { %1027 = vmatpush1.bf16.msra.mxu1 %v3244_v20  ;;  %946 = vmatprep.subr.bf16.mxu0 %v3249_v21  ;;  %v3335_v20 = vld [vmem:[#allocation7 + $0x44] ss:$16 sps:$4 sm:$0xff]   ;;  %v3338_v21 = vld [vmem:[#allocation7 + $0x4c] ss:$16 sps:$4 sm:$0xff]  }
  0x99   :  { %1028 = vmatprep.subr.bf16.mxu1 %v3252_v22  ;;  %v3333_v22 = vld [vmem:[#allocation7 + $0x40] ss:$16 sps:$4 sm:$0xff]  }
  0x9b   :  { %947 = vmatpush1.bf16.msra.mxu0 %v3247_v23  ;;  %v3336_v23 = vld [vmem:[#allocation7 + $0x48] ss:$16 sps:$4 sm:$0xff]  }
  0x9c   :  { %1029 = vmatpush1.bf16.msra.mxu1 %v3250_v24  ;;  %948 = vmatprep.subr.bf16.mxu0 %v3255_v25  ;;  %v3341_v24 = vld [vmem:[#allocation7 + $0x64] ss:$16 sps:$4 sm:$0xff]   ;;  %v3344_v25 = vld [vmem:[#allocation7 + $0x6c] ss:$16 sps:$4 sm:$0xff]  }
  0x9d   :  { %1030 = vmatprep.subr.bf16.mxu1 %v3258_v26  ;;  %v3339_v26 = vld [vmem:[#allocation7 + $0x60] ss:$16 sps:$4 sm:$0xff]  }
  0x9f   :  { %949 = vmatpush1.bf16.msra.mxu0 %v3253_v28  ;;  %v3347_v28 = vld [vmem:[#allocation7 + $0x84] ss:$16 sps:$4 sm:$0xff]  }
  0xa0   :  { %1031 = vmatpush1.bf16.msra.mxu1 %v3256_v29  ;;  %950 = vmatprep.subr.bf16.mxu0 %v3261_v30  ;;  %v3350_v29 = vld [vmem:[#allocation7 + $0x8c] ss:$16 sps:$4 sm:$0xff]   ;;  %v3345_v30 = vld [vmem:[#allocation7 + $0x80] ss:$16 sps:$4 sm:$0xff]  }
  0xa1   :  { %1032 = vmatprep.subr.bf16.mxu1 %v3264_v31  ;;  %v3348_v31 = vld [vmem:[#allocation7 + $0x88] ss:$16 sps:$4 sm:$0xff]  }
  0xa3   :  { %951 = vmatpush1.bf16.msra.mxu0 %v3259_v32  ;;  %v3353_v32 = vld [vmem:[#allocation7 + $0xa4] ss:$16 sps:$4 sm:$0xff]  }
  0xa4   :  { %1033 = vmatpush1.bf16.msra.mxu1 %v3262_v33  ;;  %952 = vmatprep.subr.bf16.mxu0 %v3267_v36  ;;  %v3356_v33 = vld [vmem:[#allocation7 + $0xac] ss:$16 sps:$4 sm:$0xff]   ;;  %v3359_v36 = vld [vmem:[#allocation7 + $0xc4] ss:$16 sps:$4 sm:$0xff]  }
  0xa5   :  { %1034 = vmatprep.subr.bf16.mxu1 %v3270_v37  ;;  %v3362_v37 = vld [vmem:[#allocation7 + $0xcc] ss:$16 sps:$4 sm:$0xff]  }
  0xa7   :  { %953 = vmatpush1.bf16.msra.mxu0 %v3265_v39  ;;  %v3360_v39 = vld [vmem:[#allocation7 + $0xc8] ss:$16 sps:$4 sm:$0xff]  }
  0xa8   :  { %1035 = vmatpush1.bf16.msra.mxu1 %v3268_v40  ;;  %954 = vmatprep.subr.bf16.mxu0 %v3273_v41  ;;  %v3365_v40 = vld [vmem:[#allocation7 + $0xe4] ss:$16 sps:$4 sm:$0xff]   ;;  %v3368_v41 = vld [vmem:[#allocation7 + $0xec] ss:$16 sps:$4 sm:$0xff]  }
  0xa9   :  { %1036 = vmatprep.subr.bf16.mxu1 %v3276_v42  ;;  %v3363_v42 = vld [vmem:[#allocation7 + $0xe0] ss:$16 sps:$4 sm:$0xff]  }
  0xab   :  { %955 = vmatpush1.bf16.msra.mxu0 %v3271_v43  ;;  %v3366_v43 = vld [vmem:[#allocation7 + $0xe8] ss:$16 sps:$4 sm:$0xff]  }
  0xac   :  { %1037 = vmatpush1.bf16.msra.mxu1 %v3274_v44  ;;  %956 = vmatprep.subr.bf16.mxu0 %v3279_v45  ;;  %v3371_v44 = vld [vmem:[#allocation7 + $0x104] ss:$16 sps:$4 sm:$0xff]   ;;  %v3374_v45 = vld [vmem:[#allocation7 + $0x10c] ss:$16 sps:$4 sm:$0xff]  }
  0xad   :  { %1038 = vmatprep.subr.bf16.mxu1 %v3282_v46  ;;  %v3369_v46 = vld [vmem:[#allocation7 + $0x100] ss:$16 sps:$4 sm:$0xff]  }
  0xaf   :  { %957 = vmatpush1.bf16.msra.mxu0 %v3277_v49  ;;  %v3380_v49 = vld [vmem:[#allocation7 + $0x12c] ss:$16 sps:$4 sm:$0xff]  }
  0xb0   :  { %1039 = vmatpush1.bf16.msra.mxu1 %v3280_v50  ;;  %958 = vmatprep.subr.bf16.mxu0 %v3285_v51  ;;  %v3375_v50 = vld [vmem:[#allocation7 + $0x120] ss:$16 sps:$4 sm:$0xff]   ;;  %v3378_v51 = vld [vmem:[#allocation7 + $0x128] ss:$16 sps:$4 sm:$0xff]  }
  0xb1   :  { %1040 = vmatprep.subr.bf16.mxu1 %v3288_v52  ;;  %v3383_v52 = vld [vmem:[#allocation7 + $0x144] ss:$16 sps:$4 sm:$0xff]  }
  0xb3   :  { %959 = vmatpush1.bf16.msra.mxu0 %v3283_v53  ;;  %v3386_v53 = vld [vmem:[#allocation7 + $0x14c] ss:$16 sps:$4 sm:$0xff]  }
  0xb4   :  { %1041 = vmatpush1.bf16.msra.mxu1 %v3286_v54  ;;  %960 = vmatprep.subr.bf16.mxu0 %v3291_v55  ;;  %v3381_v54 = vld [vmem:[#allocation7 + $0x140] ss:$16 sps:$4 sm:$0xff]   ;;  %v3384_v55 = vld [vmem:[#allocation7 + $0x148] ss:$16 sps:$4 sm:$0xff]  }
  0xb5   :  { %1042 = vmatprep.subr.bf16.mxu1 %v3294_v56  ;;  %v3389_v56 = vld [vmem:[#allocation7 + $0x164] ss:$16 sps:$4 sm:$0xff]  }
  0xb7   :  { %961 = vmatpush1.bf16.msra.mxu0 %v3289_v57  ;;  %v3392_v57 = vld [vmem:[#allocation7 + $0x16c] ss:$16 sps:$4 sm:$0xff]  }
  0xb8   :  { %1043 = vmatpush1.bf16.msra.mxu1 %v3292_v58  ;;  %962 = vmatprep.subr.bf16.mxu0 %v3297_v59  ;;  %v3387_v58 = vld [vmem:[#allocation7 + $0x160] ss:$16 sps:$4 sm:$0xff]   ;;  %v3390_v59 = vld [vmem:[#allocation7 + $0x168] ss:$16 sps:$4 sm:$0xff]  }
  0xb9   :  { %1044 = vmatprep.subr.bf16.mxu1 %v3300_v60  ;;  %v3393_v60 = vld [vmem:[#allocation7 + $0x180] ss:$16 sps:$4 sm:$0xff]  }
  0xbb   :  { %963 = vmatpush1.bf16.msra.mxu0 %v3295_v61  ;;  %v3395_v61 = vld [vmem:[#allocation7 + $0x184] ss:$16 sps:$4 sm:$0xff]  }
  0xbc   :  { %1045 = vmatpush1.bf16.msra.mxu1 %v3298_v62  ;;  %964 = vmatprep.subr.bf16.mxu0 %v3303_v63  ;;  %v3396_v62 = vld [vmem:[#allocation7 + $0x188] ss:$16 sps:$4 sm:$0xff]   ;;  %v3398_v63 = vld [vmem:[#allocation7 + $0x18c] ss:$16 sps:$4 sm:$0xff]  }
  0xbd   :  { %1046 = vmatprep.subr.bf16.mxu1 %v3306_v0  ;;  %v3401_v0 = vld [vmem:[#allocation7 + $0x1a4] ss:$16 sps:$4 sm:$0xff]  }
  0xbf   :  { %965 = vmatpush1.bf16.msra.mxu0 %v3301_v1  ;;  %v3404_v1 = vld [vmem:[#allocation7 + $0x1ac] ss:$16 sps:$4 sm:$0xff]  }
  0xc0   :  { %1047 = vmatpush1.bf16.msra.mxu1 %v3304_v2  ;;  %966 = vmatprep.subr.bf16.mxu0 %v3309_v3  ;;  %v3399_v2 = vld [vmem:[#allocation7 + $0x1a0] ss:$16 sps:$4 sm:$0xff]   ;;  %v3402_v3 = vld [vmem:[#allocation7 + $0x1a8] ss:$16 sps:$4 sm:$0xff]  }
  0xc1   :  { %1048 = vmatprep.subr.bf16.mxu1 %v3312_v4  ;;  %v3407_v4 = vld [vmem:[#allocation7 + $0x1c4] ss:$16 sps:$4 sm:$0xff]  }
  0xc3   :  { %967 = vmatpush1.bf16.msra.mxu0 %v3307_v5  ;;  %v3410_v5 = vld [vmem:[#allocation7 + $0x1cc] ss:$16 sps:$4 sm:$0xff]  }
  0xc4   :  { %1049 = vmatpush1.bf16.msra.mxu1 %v3310_v6  ;;  %968 = vmatprep.subr.bf16.mxu0 %v3315_v7  ;;  %v3405_v6 = vld [vmem:[#allocation7 + $0x1c0] ss:$16 sps:$4 sm:$0xff]   ;;  %v3408_v7 = vld [vmem:[#allocation7 + $0x1c8] ss:$16 sps:$4 sm:$0xff]  }
  0xc5   :  { %1050 = vmatprep.subr.bf16.mxu1 %v3318_v8  ;;  %v3413_v8 = vld [vmem:[#allocation7 + $0x1e4] ss:$16 sps:$4 sm:$0xff]  }
  0xc7   :  { %969 = vmatpush1.bf16.msra.mxu0 %v3313_v9  ;;  %v3416_v9 = vld [vmem:[#allocation7 + $0x1ec] ss:$16 sps:$4 sm:$0xff]  }
  0xc8   :  { %1051 = vmatpush1.bf16.msra.mxu1 %v3316_v10  ;;  %2037 = vmatprep.subr.bf16.mxu0 %v3323_v12  ;;  %v3411_v10 = vld [vmem:[#allocation7 + $0x1e0] ss:$16 sps:$4 sm:$0xff]   ;;  %v3419_v12 = vld [vmem:[#allocation7 + $0x204] ss:$16 sps:$4 sm:$0xff]  }
  0xc9   :  { %2119 = vmatprep.subr.bf16.mxu1 %v3326_v13  ;;  %v3422_v13 = vld [vmem:[#allocation7 + $0x20c] ss:$16 sps:$4 sm:$0xff]  }
  0xca   :  { %971 = vmatmul.mubr.bf16.vlgmr.msra.gmra.mrb[0].mxu0 %v2764_v11 }
  0xcb   :  { %1053 = vmatmul.mubr.bf16.vlgmr.msra.gmra.mrb[0].mxu1 %v2764_v11  ;;  %2038 = vmatpush1.bf16.msra.mxu0 %v3321_v14  ;;  %v3414_v11 = vld [vmem:[#allocation7 + $0x1e8] ss:$16 sps:$4 sm:$0xff]  }
  0xcc   :  { %2120 = vmatpush1.bf16.msra.mxu1 %v3324_v15  ;;  %2039 = vmatprep.subr.bf16.mxu0 %v3329_v16 }
  0xcd   :  { %2121 = vmatprep.subr.bf16.mxu1 %v3332_v17 }
  0xcf   :  { %2040 = vmatpush1.bf16.msra.mxu0 %v3327_v18 }
  0xd0   :  { %2122 = vmatpush1.bf16.msra.mxu1 %v3330_v19  ;;  %2041 = vmatprep.subr.bf16.mxu0 %v3335_v20 }
  0xd1   :  { %2123 = vmatprep.subr.bf16.mxu1 %v3338_v21 }
  0xd3   :  { %2042 = vmatpush1.bf16.msra.mxu0 %v3333_v22 }
  0xd4   :  { %2124 = vmatpush1.bf16.msra.mxu1 %v3336_v23  ;;  %2043 = vmatprep.subr.bf16.mxu0 %v3341_v24 }
  0xd5   :  { %2125 = vmatprep.subr.bf16.mxu1 %v3344_v25 }
  0xd7   :  { %2044 = vmatpush1.bf16.msra.mxu0 %v3339_v26 }
  0xd8   :  { %2126 = vmatpush1.bf16.msra.mxu1 %v3342_v27  ;;  %2045 = vmatprep.subr.bf16.mxu0 %v3347_v28 }
  0xd9   :  { %2127 = vmatprep.subr.bf16.mxu1 %v3350_v29 }
  0xdb   :  { %2046 = vmatpush1.bf16.msra.mxu0 %v3345_v30 }
  0xdc   :  { %2128 = vmatpush1.bf16.msra.mxu1 %v3348_v31  ;;  %2047 = vmatprep.subr.bf16.mxu0 %v3353_v32 }
  0xdd   :  { %2129 = vmatprep.subr.bf16.mxu1 %v3356_v33 }
  0xdf   :  { %2048 = vmatpush1.bf16.msra.mxu0 %v3351_v34 }
  0xe0   :  { %2130 = vmatpush1.bf16.msra.mxu1 %v3354_v35  ;;  %2049 = vmatprep.subr.bf16.mxu0 %v3359_v36 }
  0xe1   :  { %2131 = vmatprep.subr.bf16.mxu1 %v3362_v37 }
  0xe3   :  { %2050 = vmatpush1.bf16.msra.mxu0 %v3357_v38 }
  0xe4   :  { %2132 = vmatpush1.bf16.msra.mxu1 %v3360_v39  ;;  %2051 = vmatprep.subr.bf16.mxu0 %v3365_v40 }
  0xe5   :  { %2133 = vmatprep.subr.bf16.mxu1 %v3368_v41 }
  0xe7   :  { %2052 = vmatpush1.bf16.msra.mxu0 %v3363_v42 }
  0xe8   :  { %2134 = vmatpush1.bf16.msra.mxu1 %v3366_v43  ;;  %2053 = vmatprep.subr.bf16.mxu0 %v3371_v44 }
  0xe9   :  { %2135 = vmatprep.subr.bf16.mxu1 %v3374_v45 }
  0xeb   :  { %2054 = vmatpush1.bf16.msra.mxu0 %v3369_v46 }
  0xec   :  { %2136 = vmatpush1.bf16.msra.mxu1 %v3372_v47  ;;  %2055 = vmatprep.subr.bf16.mxu0 %v3377_v48 }
  0xed   :  { %2137 = vmatprep.subr.bf16.mxu1 %v3380_v49 }
  0xef   :  { %2056 = vmatpush1.bf16.msra.mxu0 %v3375_v50 }
  0xf0   :  { %2138 = vmatpush1.bf16.msra.mxu1 %v3378_v51  ;;  %2057 = vmatprep.subr.bf16.mxu0 %v3383_v52 }
  0xf1   :  { %2139 = vmatprep.subr.bf16.mxu1 %v3386_v53 }
  0xf3   :  { %2058 = vmatpush1.bf16.msra.mxu0 %v3381_v54 }
  0xf4   :  { %2140 = vmatpush1.bf16.msra.mxu1 %v3384_v55  ;;  %2059 = vmatprep.subr.bf16.mxu0 %v3389_v56 }
  0xf5   :  { %2141 = vmatprep.subr.bf16.mxu1 %v3392_v57 }
  0xf7   :  { %2060 = vmatpush1.bf16.msra.mxu0 %v3387_v58 }
  0xf8   :  { %2142 = vmatpush1.bf16.msra.mxu1 %v3390_v59  ;;  %2061 = vmatprep.subr.bf16.mxu0 %v3395_v61 }
  0xf9   :  { %2143 = vmatprep.subr.bf16.mxu1 %v3398_v63 }
  0xfb   :  { %2062 = vmatpush1.bf16.msra.mxu0 %v3393_v60 }
  0xfc   :  { %2144 = vmatpush1.bf16.msra.mxu1 %v3396_v62  ;;  %2063 = vmatprep.subr.bf16.mxu0 %v3401_v0 }
  0xfd   :  { %2145 = vmatprep.subr.bf16.mxu1 %v3404_v1 }
  0xff   :  { %2064 = vmatpush1.bf16.msra.mxu0 %v3399_v2 }
 0x100   :  { %2146 = vmatpush1.bf16.msra.mxu1 %v3402_v3  ;;  %2065 = vmatprep.subr.bf16.mxu0 %v3407_v4 }
 0x101   :  { %2147 = vmatprep.subr.bf16.mxu1 %v3410_v5 }
 0x103   :  { %2066 = vmatpush1.bf16.msra.mxu0 %v3405_v6 }
 0x104   :  { %2148 = vmatpush1.bf16.msra.mxu1 %v3408_v7  ;;  %2067 = vmatprep.subr.bf16.mxu0 %v3413_v8 }
 0x105   :  { %2149 = vmatprep.subr.bf16.mxu1 %v3416_v9 }
 0x107   :  { %2068 = vmatpush1.bf16.msra.mxu0 %v3411_v10 }
 0x108   :  { %2150 = vmatpush1.bf16.msra.mxu1 %v3414_v11  ;;  %2078 = vmatprep.subr.bf16.mxu0 %v3419_v12 }
 0x109   :  { %2160 = vmatprep.subr.bf16.mxu1 %v3422_v13 }
 0x19d   :  { %v3777_v14 = vpop.f32.mrb[0].mxu0 }
 0x19e   :  { %v3779_v15 = vpop.f32.mrb[0].mxu1  ;;  %v1063_v16 = vrot.slane %v3777_v14, 4  ;;  %v1087_v17 = vmul.f32 %v3777_v14, %v3777_v14  ;;  %v3787_v20 = vpop.f32.mrb[1].mxu0 }
 0x19f   :  { %v1075_v18 = vrot.slane %v3779_v15, 4  ;;  %v1089_v19 = vmul.f32 %v3779_v15, %v3779_v15  ;;  %v3789_v21 = vpop.f32.mrb[1].mxu1  ;;  %v1069_v22 = vrot.slane %v3787_v20, 4  ;;  %v1088_v23 = vmul.f32 %v3787_v20, %v3787_v20  ;;  %v976_v26 = vpop.f32.mrb[2].mxu0 }
 0x1a0   :  { %v1081_v24 = vrot.slane %v3789_v21, 4  ;;  %v1090_v25 = vmul.f32 %v3789_v21, %v3789_v21  ;;  %v1058_v27 = vpop.f32.mrb[2].mxu1  ;;  %v1064_v28 = vadd.f32 %v1063_v16, %v3777_v14  ;;  %v1091_v29 = vrot.slane %v1087_v17, 4  ;;  %v977_v32 = vpop.f32.mrb[3].mxu0 }
 0x1a1   :  { %v1076_v30 = vadd.f32 %v1075_v18, %v3779_v15  ;;  %v1103_v31 = vrot.slane %v1089_v19, 4  ;;  %v1059_v33 = vpop.f32.mrb[3].mxu1  ;;  %v1070_v34 = vadd.f32 %v1069_v22, %v3787_v20  ;;  %v1097_v35 = vrot.slane %v1088_v23, 4 }
 0x1a2   :  { %v1082_v36 = vadd.f32 %v1081_v24, %v3789_v21  ;;  %v1109_v37 = vrot.slane %v1090_v25, 4  ;;  %v1065_v38 = vrot.slane %v1064_v28, 2  ;;  %v1092_v39 = vadd.f32 %v1091_v29, %v1087_v17 }
 0x1a3   :  { %v1077_v40 = vrot.slane %v1076_v30, 2  ;;  %v1104_v41 = vadd.f32 %v1103_v31, %v1089_v19  ;;  %v1071_v42 = vrot.slane %v1070_v34, 2  ;;  %v1098_v43 = vadd.f32 %v1097_v35, %v1088_v23 }
 0x1a4   :  { %v1083_v44 = vrot.slane %v1082_v36, 2  ;;  %v1110_v45 = vadd.f32 %v1109_v37, %v1090_v25  ;;  %v1066_v46 = vadd.f32 %v1065_v38, %v1064_v28  ;;  %v1093_v47 = vrot.slane %v1092_v39, 2 }
 0x1a5   :  { %v1078_v48 = vadd.f32 %v1077_v40, %v1076_v30  ;;  %v1105_v49 = vrot.slane %v1104_v41, 2  ;;  %v1072_v50 = vadd.f32 %v1071_v42, %v1070_v34  ;;  %v1099_v51 = vrot.slane %v1098_v43, 2 }
 0x1a6   :  { %v1084_v52 = vadd.f32 %v1083_v44, %v1082_v36  ;;  %v1111_v53 = vrot.slane %v1110_v45, 2  ;;  %v1067_v54 = vrot.slane %v1066_v46, 1  ;;  %v1094_v55 = vadd.f32 %v1093_v47, %v1092_v39 }
 0x1a7   :  { %v1079_v56 = vrot.slane %v1078_v48, 1  ;;  %v1106_v57 = vadd.f32 %v1105_v49, %v1104_v41  ;;  %v1073_v58 = vrot.slane %v1072_v50, 1  ;;  %v1100_v59 = vadd.f32 %v1099_v51, %v1098_v43 }
 0x1a8   :  { %v1085_v60 = vrot.slane %v1084_v52, 1  ;;  %v1112_v61 = vadd.f32 %v1111_v53, %v1110_v45  ;;  %v1068_v62 = vadd.f32 %v1067_v54, %v1066_v46  ;;  %v1095_v63 = vrot.slane %v1094_v55, 1  ;;  %v1061_v53 = vld [vmem:[%s3895_s2] sm:$0xf] }
 0x1a9   :  { %v1080_v0 = vadd.f32 %v1079_v56, %v1078_v48  ;;  %v1107_v1 = vrot.slane %v1106_v57, 1  ;;  %v1074_v2 = vadd.f32 %v1073_v58, %v1072_v50  ;;  %v1101_v3 = vrot.slane %v1100_v59, 1 }
 0x1aa   :  { %v1086_v4 = vadd.f32 %v1085_v60, %v1084_v52  ;;  %v1113_v5 = vrot.slane %v1112_v61, 1  ;;  %v1096_v6 = vadd.f32 %v1095_v63, %v1094_v55  ;;  %v1115_v7 = vmul.f32 0.125, %v1068_v62 }
 0x1ab   :  { %v1108_v8 = vadd.f32 %v1107_v1, %v1106_v57  ;;  %v1117_v9 = vmul.f32 0.125, %v1080_v0  ;;  %v1102_v10 = vadd.f32 %v1101_v3, %v1100_v59  ;;  %v1116_v11 = vmul.f32 0.125, %v1074_v2 }
 0x1ac   :  { %v1114_v12 = vadd.f32 %v1113_v5, %v1112_v61  ;;  %v1118_v13 = vmul.f32 0.125, %v1086_v4  ;;  %v1119_v16 = vmul.f32 0.125, %v1096_v6  ;;  %v1123_v17 = vmul.f32 %v1115_v7, %v1115_v7 }
 0x1ad   :  { %v1121_v18 = vmul.f32 0.125, %v1108_v8  ;;  %v1125_v19 = vmul.f32 %v1117_v9, %v1117_v9  ;;  %v1120_v22 = vmul.f32 0.125, %v1102_v10  ;;  %v1124_v23 = vmul.f32 %v1116_v11, %v1116_v11 }
 0x1ae   :  { %v1122_v24 = vmul.f32 0.125, %v1114_v12  ;;  %v1126_v25 = vmul.f32 %v1118_v13, %v1118_v13  ;;  %v1127_v26 = vsub.f32 %v1119_v16, %v1123_v17  ;;  %v3666_v38 = vmov 1966171168  }
 0x1af   :  { %v1129_v27 = vsub.f32 %v1121_v18, %v1125_v19  ;;  %v1128_v28 = vsub.f32 %v1120_v22, %v1124_v23  ;;  %v1150_v39 = vunpack.c.l.s4 %v3666_v38  ;;  %v1152_v40 = vlaneseq  ;;  %v3426_v38 = vld [vmem:[#allocation7 + $0x228] ss:$16 sps:$4 sm:$0xff]  }
 0x1b0   :  { %v1130_v29 = vsub.f32 %v1122_v24, %v1126_v25  ;;  %v1131_v30 = vmax.f32 %v1127_v26, 0.0 }
 0x1b1   :  { %v1133_v31 = vmax.f32 %v1129_v27, 0.0  ;;  %v1132_v32 = vmax.f32 %v1128_v28, 0.0  ;;  %v1151_v41 = vunpack.c.0.s8 %v1150_v39  ;;  %v1153_v42 = vshrl.u32 %v1152_v40, 7  ;;  %v3431_v39 = vld [vmem:[#allocation7 + $0x244] ss:$16 sps:$4 sm:$0xff]  }
 0x1b2   :  { %v1134_v33 = vmax.f32 %v1130_v29, 0.0  ;;  %v1135_v34 = vadd.f32 1e-05, %v1131_v30  ;;  %v3434_v40 = vld [vmem:[#allocation7 + $0x24c] ss:$16 sps:$4 sm:$0xff]  }
 0x1b3   :  { %v1137_v35 = vadd.f32 1e-05, %v1133_v31  ;;  %v1136_v36 = vadd.f32 1e-05, %v1132_v32  ;;  %v3801_v45 = vsub.s32 %v1151_v41, %v1153_v42  ;;  %v3808_v54 = vsub.s32 2, %v1153_v42 }
 0x1b4   :  { %v1138_v37 = vadd.f32 1e-05, %v1134_v33  ;;  %3545 = vrsqrt.f32 %v1135_v34  ;;  %v3811_v56 = vsub.s32 3, %v1153_v42  ;;  %v3813_v57 = vsub.s32 0, %v1153_v42  ;;  %v3417_v31 = vld [vmem:[#allocation7 + $0x200] ss:$16 sps:$4 sm:$0xff]  }
 0x1b5   :  { %3547 = vrsqrt.f32 %v1137_v35  ;;  %v3815_v58 = vsub.s32 1, %v1153_v42  ;;  %v3420_v32 = vld [vmem:[#allocation7 + $0x208] ss:$16 sps:$4 sm:$0xff]   ;;  %v3425_v34 = vld [vmem:[#allocation7 + $0x224] ss:$16 sps:$4 sm:$0xff]  }
 0x1b6   :  { %3549 = vrsqrt.f32 %v1136_v36  ;;  %v3428_v35 = vld [vmem:[#allocation7 + $0x22c] ss:$16 sps:$4 sm:$0xff]   ;;  %v3429_v41 = vld [vmem:[#allocation7 + $0x240] ss:$16 sps:$4 sm:$0xff]   ;;  %v3432_v42 = vld [vmem:[#allocation7 + $0x248] ss:$16 sps:$4 sm:$0xff]  }
 0x1b7   :  { %3551 = vrsqrt.f32 %v1138_v37  ;;  %v3423_v37 = vld [vmem:[#allocation7 + $0x220] ss:$16 sps:$4 sm:$0xff]  }
 0x1be   :  { %v3546_v43 = vpop.eup %3545 }
 0x1bf   :  { %v3548_v44 = vpop.eup %3547 }
 0x1c0   :  { %v3550_v46 = vpop.eup %3549 }
 0x1c1   :  { %v3552_v47 = vpop.eup %3551  ;;  %v1147_v48 = vcombine.low %v3546_v43, %v3550_v46  ;;  %v3437_v43 = vld [vmem:[#allocation7 + $0x264] ss:$16 sps:$4 sm:$0xff]   ;;  %v3435_v46 = vld [vmem:[#allocation7 + $0x260] ss:$16 sps:$4 sm:$0xff]  }
 0x1c2   :  { %v1148_v49 = vcombine.low %v3548_v44, %v3552_v47  ;;  %v3440_v44 = vld [vmem:[#allocation7 + $0x26c] ss:$16 sps:$4 sm:$0xff]   ;;  %v3438_v47 = vld [vmem:[#allocation7 + $0x268] ss:$16 sps:$4 sm:$0xff]  }
 0x1c3   :  { %v1155_v50 = vrot.slane %v1147_v48, %v3801_v45  ;;  %v3443_v48 = vld [vmem:[#allocation7 + $0x284] ss:$16 sps:$4 sm:$0xff]  }
 0x1c4   :  { %v1162_v51 = vrot.slane %v1148_v49, %v3801_v45  ;;  %v3446_v49 = vld [vmem:[#allocation7 + $0x28c] ss:$16 sps:$4 sm:$0xff]  }
 0x1c6   :  { %v1163_v52 = vcombine.low %v1155_v50, %v1162_v51  ;;  %v3441_v50 = vld [vmem:[#allocation7 + $0x280] ss:$16 sps:$4 sm:$0xff]   ;;  %v3444_v51 = vld [vmem:[#allocation7 + $0x288] ss:$16 sps:$4 sm:$0xff]  }
 0x1c8   :  { %v1170_v55 = vrot.slane %v1163_v52, %v3801_v45  ;;  %v3449_v52 = vld [vmem:[#allocation7 + $0x2a4] ss:$16 sps:$4 sm:$0xff]  }
 0x1ca   :  { %v1172_v59 = vmul.f32 %v1170_v55, %v1061_v53  ;;  %v3452_v53 = vld [vmem:[#allocation7 + $0x2ac] ss:$16 sps:$4 sm:$0xff]   ;;  %v3447_v55 = vld [vmem:[#allocation7 + $0x2a0] ss:$16 sps:$4 sm:$0xff]  }
 0x1cc   :  { %v1185_v60 = vrot.slane %v1172_v59, %v3808_v54  ;;  %v1189_v61 = vrot.slane %v1172_v59, %v3811_v56  ;;  %v1177_v62 = vrot.slane %v1172_v59, %v3813_v57  ;;  %v1181_v63 = vrot.slane %v1172_v59, %v3815_v58  ;;  %v3450_v59 = vld [vmem:[#allocation7 + $0x2a8] ss:$16 sps:$4 sm:$0xff]  }
 0x1ce   :  { %v1196_v0 = vmul.f32 %v1185_v60, %v1117_v9  ;;  %v1197_v1 = vmul.f32 %v1189_v61, %v1118_v13  ;;  %v1231_v2 = vmul.f32 %v1189_v61, %v3789_v21  ;;  %v1194_v3 = vmul.f32 %v1177_v62, %v1115_v7  ;;  %v1062_v9 = vld [vmem:[%s3896_s3] sm:$0xf]  ;;  %v3458_v61 = vld [vmem:[#allocation7 + $0x2cc] ss:$16 sps:$4 sm:$0xff]  }
 0x1cf   :  { %v1195_v4 = vmul.f32 %v1181_v63, %v1116_v11  ;;  %v1229_v5 = vmul.f32 %v1181_v63, %v3787_v20  ;;  %v1228_v6 = vmul.f32 %v1177_v62, %v3777_v14  ;;  %v1230_v8 = vmul.f32 %v1185_v60, %v3779_v15  ;;  %v3455_v60 = vld [vmem:[#allocation7 + $0x2c4] ss:$16 sps:$4 sm:$0xff]   ;;  %v3453_v62 = vld [vmem:[#allocation7 + $0x2c0] ss:$16 sps:$4 sm:$0xff]   ;;  %v3456_v63 = vld [vmem:[#allocation7 + $0x2c8] ss:$16 sps:$4 sm:$0xff]  }
 0x1d0   :  { %v1203_v10 = vcombine.low %v1196_v0, %v1197_v1  ;;  %v3461_v0 = vld [vmem:[#allocation7 + $0x2e4] ss:$16 sps:$4 sm:$0xff]   ;;  %v3464_v1 = vld [vmem:[#allocation7 + $0x2ec] ss:$16 sps:$4 sm:$0xff]  }
 0x1d1   :  { %v1202_v12 = vcombine.low %v1194_v3, %v1195_v4  ;;  %v3462_v3 = vld [vmem:[#allocation7 + $0x2e8] ss:$16 sps:$4 sm:$0xff]   ;;  %v3467_v4 = vld [vmem:[#allocation7 + $0x304] ss:$16 sps:$4 sm:$0xff]  }
 0x1d2   :  { %v1217_v16 = vrot.slane %v1203_v10, %v3801_v45  ;;  %v3473_v10 = vld [vmem:[#allocation7 + $0x324] ss:$16 sps:$4 sm:$0xff]  }
 0x1d3   :  { %v1210_v17 = vrot.slane %v1202_v12, %v3801_v45  ;;  %v3476_v12 = vld [vmem:[#allocation7 + $0x32c] ss:$16 sps:$4 sm:$0xff]  }
 0x1d5   :  { %v1218_v18 = vcombine.low %v1210_v17, %v1217_v16  ;;  %v3471_v16 = vld [vmem:[#allocation7 + $0x320] ss:$16 sps:$4 sm:$0xff]   ;;  %v3474_v17 = vld [vmem:[#allocation7 + $0x328] ss:$16 sps:$4 sm:$0xff]  }
 0x1d7   :  { %v1225_v21 = vrot.slane %v1218_v18, %v3801_v45  ;;  %v3479_v18 = vld [vmem:[#allocation7 + $0x344] ss:$16 sps:$4 sm:$0xff]  }
 0x1d9   :  { %v1227_v7 = vsub.f32 %v1062_v9, %v1225_v21  ;;  %v3482_v9 = vld [vmem:[#allocation7 + $0x34c] ss:$16 sps:$4 sm:$0xff]   ;;  %v3477_v21 = vld [vmem:[#allocation7 + $0x340] ss:$16 sps:$4 sm:$0xff]  }
 0x1db   :  { %v1240_v20 = vrot.slane %v1227_v7, %v3815_v58  ;;  %v1236_v14 = vrot.slane %v1227_v7, %v3813_v57  ;;  %v1248_v15 = vrot.slane %v1227_v7, %v3811_v56  ;;  %v1244_v11 = vrot.slane %v1227_v7, %v3808_v54  ;;  %v3480_v7 = vld [vmem:[#allocation7 + $0x348] ss:$16 sps:$4 sm:$0xff]  }
 0x1dd   :  { %v1254_v13 = vadd.f32 %v1240_v20, %v1229_v5  ;;  %v1253_v19 = vadd.f32 %v1236_v14, %v1228_v6  ;;  %v1256_v22 = vadd.f32 %v1248_v15, %v1231_v2  ;;  %v3835_v23 = vadd.f32 %v1244_v11, %v1230_v8  ;;  %v3459_v2 = vld [vmem:[#allocation7 + $0x2e0] ss:$16 sps:$4 sm:$0xff]   ;;  %v3470_v5 = vld [vmem:[#allocation7 + $0x30c] ss:$16 sps:$4 sm:$0xff]   ;;  %v3468_v8 = vld [vmem:[#allocation7 + $0x308] ss:$16 sps:$4 sm:$0xff]  }
 0x1de   :  { %v3465_v6 = vld [vmem:[#allocation7 + $0x300] ss:$16 sps:$4 sm:$0xff]   ;;  %v3485_v20 = vld [vmem:[#allocation7 + $0x364] ss:$16 sps:$4 sm:$0xff]   ;;  %v3488_v14 = vld [vmem:[#allocation7 + $0x36c] ss:$16 sps:$4 sm:$0xff]  }
 0x1df   :  { %v1258_v24 = vmul.f32 0.01, %v1254_v13  ;;  %v1257_v25 = vmul.f32 0.01, %v1253_v19  ;;  %v1260_v26 = vmul.f32 0.01, %v1256_v22 }
 0x1e0   :  { %v3483_v15 = vld [vmem:[#allocation7 + $0x360] ss:$16 sps:$4 sm:$0xff]   ;;  %v3486_v11 = vld [vmem:[#allocation7 + $0x368] ss:$16 sps:$4 sm:$0xff]  }
 0x1e1   :  { %v1262_v27 = vmax.f32 %v1254_v13, %v1258_v24  ;;  %v1261_v28 = vmax.f32 %v1253_v19, %v1257_v25  ;;  %v1264_v29 = vmax.f32 %v1256_v22, %v1260_v26  ;;  %v3491_v13 = vld [vmem:[#allocation7 + $0x384] ss:$16 sps:$4 sm:$0xff]   ;;  %v3494_v19 = vld [vmem:[#allocation7 + $0x38c] ss:$16 sps:$4 sm:$0xff]   ;;  %v3489_v22 = vld [vmem:[#allocation7 + $0x380] ss:$16 sps:$4 sm:$0xff]  }
 0x1e2   :  { %v3492_v24 = vld [vmem:[#allocation7 + $0x388] ss:$16 sps:$4 sm:$0xff]   ;;  %v3497_v25 = vld [vmem:[#allocation7 + $0x3a4] ss:$16 sps:$4 sm:$0xff]   ;;  %v3500_v26 = vld [vmem:[#allocation7 + $0x3ac] ss:$16 sps:$4 sm:$0xff]  }
 0x1e3   :  { %v1266_v30 = vpack.c.bf16 %v1262_v27, %v1262_v27  ;;  %v1265_v33 = vpack.c.bf16 %v1261_v28, %v1261_v28  ;;  %v1268_v36 = vpack.c.bf16 %v1264_v29, %v1264_v29  ;;  %v3495_v27 = vld [vmem:[#allocation7 + $0x3a0] ss:$16 sps:$4 sm:$0xff]   ;;  %v3498_v28 = vld [vmem:[#allocation7 + $0x3a8] ss:$16 sps:$4 sm:$0xff]   ;;  %v3503_v29 = vld [vmem:[#allocation7 + $0x3c4] ss:$16 sps:$4 sm:$0xff]  }
 0x1e5   :  { %2069 = vmatprep.mubr.bf16.mxu0 %v1266_v30  ;;  %2151 = vmatprep.mubr.bf16.mxu1 %v1266_v30  ;;  %v3506_v30 = vld [vmem:[#allocation7 + $0x3cc] ss:$16 sps:$4 sm:$0xff]  }
 0x1e6   :  { %2070 = vmatmul.mubr.bf16.vlgmr.msra.gmra.mrb[4].mxu0 %v1265_v33  ;;  %2152 = vmatmul.mubr.bf16.vlgmr.msra.gmra.mrb[4].mxu1 %v1265_v33  ;;  %v3509_v33 = vld [vmem:[#allocation7 + $0x3e4] ss:$16 sps:$4 sm:$0xff]  }
 0x1e7   :  { %2079 = vmatpush1.bf16.msra.mxu0 %v3417_v31  ;;  %2161 = vmatpush1.bf16.msra.mxu1 %v3420_v32  ;;  %v3501_v31 = vld [vmem:[#allocation7 + $0x3c0] ss:$16 sps:$4 sm:$0xff]   ;;  %v3504_v32 = vld [vmem:[#allocation7 + $0x3c8] ss:$16 sps:$4 sm:$0xff]  }
 0x1e8   :  { %2110 = vmatprep.mubr.bf16.mxu0 %v1268_v36  ;;  %2192 = vmatprep.mubr.bf16.mxu1 %v1268_v36  ;;  %v3507_v36 = vld [vmem:[#allocation7 + $0x3e0] ss:$16 sps:$4 sm:$0xff]  }
 0x1e9   :  { %2080 = vmatprep.subr.bf16.mxu0 %v3425_v34  ;;  %2162 = vmatprep.subr.bf16.mxu1 %v3428_v35  ;;  %v3512_v34 = vld [vmem:[#allocation7 + $0x3ec] ss:$16 sps:$4 sm:$0xff]   ;;  %v1259_v35 = vmul.f32 0.01, %v3835_v23 }
 0x1eb   :  { %2081 = vmatpush1.bf16.msra.mxu0 %v3423_v37  ;;  %2163 = vmatpush1.bf16.msra.mxu1 %v3426_v38  ;;  %v3510_v37 = vld [vmem:[#allocation7 + $0x3e8] ss:$16 sps:$4 sm:$0xff]   ;;  %v1263_v38 = vmax.f32 %v3835_v23, %v1259_v35  ;;  %v3521_v23 = vld [vmem:[#allocation8 + $0x50] sm:$0xff]  }
 0x1ec   :  { %2082 = vmatprep.subr.bf16.mxu0 %v3431_v39  ;;  %2164 = vmatprep.subr.bf16.mxu1 %v3434_v40  ;;  %v3513_v40 = vld [vmem:[#allocation8 + $0x40] sm:$0xff]  }
 0x1ed   :  { %v1267_v39 = vpack.c.bf16 %v1263_v38, %v1263_v38 }
 0x1ef   :  { %2083 = vmatpush1.bf16.msra.mxu0 %v3429_v41  ;;  %2165 = vmatpush1.bf16.msra.mxu1 %v3432_v42  ;;  %v3514_v41 = vld [vmem:[#allocation8 + $0xc0] sm:$0xff]  }
 0x1f0   :  { %2084 = vmatprep.subr.bf16.mxu0 %v3437_v43  ;;  %2166 = vmatprep.subr.bf16.mxu1 %v3440_v44  ;;  %v3515_v42 = vld [vmem:[#allocation8] sm:$0xff]   ;;  %v3517_v44 = vld [vmem:[#allocation8 + $0x48] sm:$0xff]  }
 0x1f1   :  { %v3516_v43 = vld [vmem:[#allocation8 + $0x80] sm:$0xff]  }
 0x1f3   :  { %2085 = vmatpush1.bf16.msra.mxu0 %v3435_v46  ;;  %2167 = vmatpush1.bf16.msra.mxu1 %v3438_v47  ;;  %v3518_v46 = vld [vmem:[#allocation8 + $0xc8] sm:$0xff]  }
 0x1f4   :  { %2086 = vmatprep.subr.bf16.mxu0 %v3443_v48  ;;  %2168 = vmatprep.subr.bf16.mxu1 %v3446_v49  ;;  %v3519_v47 = vld [vmem:[#allocation8 + $0x8] sm:$0xff]   ;;  %v3522_v49 = vld [vmem:[#allocation8 + $0xd0] sm:$0xff]  }
 0x1f5   :  { %v3520_v48 = vld [vmem:[#allocation8 + $0x88] sm:$0xff]  }
 0x1f7   :  { %2087 = vmatpush1.bf16.msra.mxu0 %v3441_v50  ;;  %2169 = vmatpush1.bf16.msra.mxu1 %v3444_v51  ;;  %v3523_v50 = vld [vmem:[#allocation8 + $0x10] sm:$0xff]  }
 0x1f8   :  { %2088 = vmatprep.subr.bf16.mxu0 %v3449_v52  ;;  %2170 = vmatprep.subr.bf16.mxu1 %v3452_v53  ;;  %v3524_v51 = vld [vmem:[#allocation8 + $0x90] sm:$0xff]   ;;  %v3525_v52 = vld [vmem:[#allocation8 + $0x58] sm:$0xff]  }
 0x1f9   :  { %v3526_v53 = vld [vmem:[#allocation8 + $0xd8] sm:$0xff]  }
 0x1fb   :  { %2089 = vmatpush1.bf16.msra.mxu0 %v3447_v55  ;;  %2171 = vmatpush1.bf16.msra.mxu1 %v3450_v59  ;;  %v3527_v55 = vld [vmem:[#allocation8 + $0x18] sm:$0xff]  }
 0x1fc   :  { %2090 = vmatprep.subr.bf16.mxu0 %v3455_v60  ;;  %2172 = vmatprep.subr.bf16.mxu1 %v3458_v61  ;;  %v3528_v59 = vld [vmem:[#allocation8 + $0x98] sm:$0xff]   ;;  %v3529_v60 = vld [vmem:[#allocation8 + $0x60] sm:$0xff]  }
 0x1fd   :  { %v3530_v61 = vld [vmem:[#allocation8 + $0xe0] sm:$0xff]  }
 0x1ff   :  { %2091 = vmatpush1.bf16.msra.mxu0 %v3453_v62  ;;  %2173 = vmatpush1.bf16.msra.mxu1 %v3456_v63  ;;  %v3531_v62 = vld [vmem:[#allocation8 + $0x20] sm:$0xff]  }
 0x200   :  { %2092 = vmatprep.subr.bf16.mxu0 %v3461_v0  ;;  %2174 = vmatprep.subr.bf16.mxu1 %v3464_v1  ;;  %v3532_v63 = vld [vmem:[#allocation8 + $0xa0] sm:$0xff]   ;;  %v3533_v0 = vld [vmem:[#allocation8 + $0x68] sm:$0xff]  }
 0x201   :  { %v3534_v1 = vld [vmem:[#allocation8 + $0xe8] sm:$0xff]  }
 0x203   :  { %2093 = vmatpush1.bf16.msra.mxu0 %v3459_v2  ;;  %2175 = vmatpush1.bf16.msra.mxu1 %v3462_v3  ;;  %v3535_v2 = vld [vmem:[#allocation8 + $0x28] sm:$0xff]  }
 0x204   :  { %2094 = vmatprep.subr.bf16.mxu0 %v3467_v4  ;;  %2176 = vmatprep.subr.bf16.mxu1 %v3470_v5  ;;  %v3536_v3 = vld [vmem:[#allocation8 + $0xa8] sm:$0xff]   ;;  %v3537_v4 = vld [vmem:[#allocation8 + $0x70] sm:$0xff]  }
 0x205   :  { %v3538_v5 = vld [vmem:[#allocation8 + $0xf0] sm:$0xff]  }
 0x207   :  { %2095 = vmatpush1.bf16.msra.mxu0 %v3465_v6  ;;  %2177 = vmatpush1.bf16.msra.mxu1 %v3468_v8  ;;  %v3539_v6 = vld [vmem:[#allocation8 + $0x30] sm:$0xff]  }
 0x208   :  { %2096 = vmatprep.subr.bf16.mxu0 %v3473_v10  ;;  %2178 = vmatprep.subr.bf16.mxu1 %v3476_v12  ;;  %v3540_v8 = vld [vmem:[#allocation8 + $0xb0] sm:$0xff]   ;;  %v3541_v10 = vld [vmem:[#allocation8 + $0x78] sm:$0xff]  }
 0x209   :  { %v3542_v12 = vld [vmem:[#allocation8 + $0xf8] sm:$0xff]  }
 0x20b   :  { %2097 = vmatpush1.bf16.msra.mxu0 %v3471_v16  ;;  %2179 = vmatpush1.bf16.msra.mxu1 %v3474_v17  ;;  %v3543_v16 = vld [vmem:[#allocation8 + $0x38] sm:$0xff]  }
 0x20c   :  { %2098 = vmatprep.subr.bf16.mxu0 %v3479_v18  ;;  %2180 = vmatprep.subr.bf16.mxu1 %v3482_v9  ;;  %v3544_v17 = vld [vmem:[#allocation8 + $0xb8] sm:$0xff]  }
 0x20f   :  { %2099 = vmatpush1.bf16.msra.mxu0 %v3477_v21  ;;  %2181 = vmatpush1.bf16.msra.mxu1 %v3480_v7 }
 0x210   :  { %2100 = vmatprep.subr.bf16.mxu0 %v3485_v20  ;;  %2182 = vmatprep.subr.bf16.mxu1 %v3488_v14 }
 0x213   :  { %2101 = vmatpush1.bf16.msra.mxu0 %v3483_v15  ;;  %2183 = vmatpush1.bf16.msra.mxu1 %v3486_v11 }
 0x214   :  { %2102 = vmatprep.subr.bf16.mxu0 %v3491_v13  ;;  %2184 = vmatprep.subr.bf16.mxu1 %v3494_v19 }
 0x217   :  { %2103 = vmatpush1.bf16.msra.mxu0 %v3489_v22  ;;  %2185 = vmatpush1.bf16.msra.mxu1 %v3492_v24 }
 0x218   :  { %2104 = vmatprep.subr.bf16.mxu0 %v3497_v25  ;;  %2186 = vmatprep.subr.bf16.mxu1 %v3500_v26 }
 0x21b   :  { %2105 = vmatpush1.bf16.msra.mxu0 %v3495_v27  ;;  %2187 = vmatpush1.bf16.msra.mxu1 %v3498_v28 }
 0x21c   :  { %2106 = vmatprep.subr.bf16.mxu0 %v3503_v29  ;;  %2188 = vmatprep.subr.bf16.mxu1 %v3506_v30 }
 0x21f   :  { %2107 = vmatpush1.bf16.msra.mxu0 %v3501_v31  ;;  %2189 = vmatpush1.bf16.msra.mxu1 %v3504_v32 }
 0x220   :  { %2108 = vmatprep.subr.bf16.mxu0 %v3509_v33  ;;  %2190 = vmatprep.subr.bf16.mxu1 %v3512_v34 }
 0x223   :  { %2109 = vmatpush1.bf16.msra.mxu0 %v3507_v36  ;;  %2191 = vmatpush1.bf16.msra.mxu1 %v3510_v37 }
 0x224   :  { %3057 = vmatprep.subr.bf16.mxu0 %v3513_v40  ;;  %3079 = vmatprep.subr.bf16.mxu1 %v3514_v41 }
 0x226   :  { %2111 = vmatmul.mubr.bf16.vlgmr.msra.gmra.mrb[4].mxu0 %v1267_v39  ;;  %2193 = vmatmul.mubr.bf16.vlgmr.msra.gmra.mrb[4].mxu1 %v1267_v39 }
 0x227   :  { %3058 = vmatpush3.bf16.msra.mxu0 %v3515_v42  ;;  %3080 = vmatpush3.bf16.msra.mxu1 %v3516_v43 }
 0x228   :  { %3059 = vmatprep.subr.bf16.mxu0 %v3517_v44  ;;  %3081 = vmatprep.subr.bf16.mxu1 %v3518_v46 }
 0x22b   :  { %3060 = vmatpush3.bf16.msra.mxu0 %v3519_v47  ;;  %3082 = vmatpush3.bf16.msra.mxu1 %v3520_v48 }
 0x22c   :  { %3061 = vmatprep.subr.bf16.mxu0 %v3521_v23  ;;  %3083 = vmatprep.subr.bf16.mxu1 %v3522_v49 }
 0x22f   :  { %3062 = vmatpush3.bf16.msra.mxu0 %v3523_v50  ;;  %3084 = vmatpush3.bf16.msra.mxu1 %v3524_v51 }
 0x230   :  { %3063 = vmatprep.subr.bf16.mxu0 %v3525_v52  ;;  %3085 = vmatprep.subr.bf16.mxu1 %v3526_v53 }
 0x233   :  { %3064 = vmatpush3.bf16.msra.mxu0 %v3527_v55  ;;  %3086 = vmatpush3.bf16.msra.mxu1 %v3528_v59 }
 0x234   :  { %3065 = vmatprep.subr.bf16.mxu0 %v3529_v60  ;;  %3087 = vmatprep.subr.bf16.mxu1 %v3530_v61 }
 0x237   :  { %3066 = vmatpush3.bf16.msra.mxu0 %v3531_v62  ;;  %3088 = vmatpush3.bf16.msra.mxu1 %v3532_v63 }
 0x238   :  { %3067 = vmatprep.subr.bf16.mxu0 %v3533_v0  ;;  %3089 = vmatprep.subr.bf16.mxu1 %v3534_v1 }
 0x23b   :  { %3068 = vmatpush3.bf16.msra.mxu0 %v3535_v2  ;;  %3090 = vmatpush3.bf16.msra.mxu1 %v3536_v3 }
 0x23c   :  { %3069 = vmatprep.subr.bf16.mxu0 %v3537_v4  ;;  %3091 = vmatprep.subr.bf16.mxu1 %v3538_v5 }
 0x23f   :  { %3070 = vmatpush3.bf16.msra.mxu0 %v3539_v6  ;;  %3092 = vmatpush3.bf16.msra.mxu1 %v3540_v8 }
 0x240   :  { %3071 = vmatprep.subr.bf16.mxu0 %v3541_v10  ;;  %3093 = vmatprep.subr.bf16.mxu1 %v3542_v12 }
 0x243   :  { %3072 = vmatpush3.bf16.msra.mxu0 %v3543_v16  ;;  %3094 = vmatpush3.bf16.msra.mxu1 %v3544_v17 }
 0x2f9   :  { %v3839_v18 = vpop.f32.mrb[4].mxu0  ;;  %v3841_v9 = vpop.f32.mrb[4].mxu1 }
 0x2fa   :  { %v2203_v21 = vrot.slane %v3839_v18, 4  ;;  %v2227_v7 = vmul.f32 %v3839_v18, %v3839_v18  ;;  %v2215_v20 = vrot.slane %v3841_v9, 4  ;;  %v2229_v14 = vmul.f32 %v3841_v9, %v3841_v9  ;;  %v3849_v15 = vpop.f32.mrb[5].mxu0  ;;  %v3851_v11 = vpop.f32.mrb[5].mxu1 }
 0x2fb   :  { %v2209_v13 = vrot.slane %v3849_v15, 4  ;;  %v2228_v19 = vmul.f32 %v3849_v15, %v3849_v15  ;;  %v2221_v22 = vrot.slane %v3851_v11, 4  ;;  %v2230_v24 = vmul.f32 %v3851_v11, %v3851_v11  ;;  %v2116_v25 = vpop.f32.mrb[6].mxu0  ;;  %v2198_v26 = vpop.f32.mrb[6].mxu1 }
 0x2fc   :  { %v2204_v27 = vadd.f32 %v2203_v21, %v3839_v18  ;;  %v2231_v28 = vrot.slane %v2227_v7, 4  ;;  %v2216_v29 = vadd.f32 %v2215_v20, %v3841_v9  ;;  %v2243_v30 = vrot.slane %v2229_v14, 4  ;;  %v2117_v31 = vpop.f32.mrb[7].mxu0  ;;  %v2199_v32 = vpop.f32.mrb[7].mxu1 }
 0x2fd   :  { %v2210_v33 = vadd.f32 %v2209_v13, %v3849_v15  ;;  %v2237_v34 = vrot.slane %v2228_v19, 4  ;;  %v2222_v35 = vadd.f32 %v2221_v22, %v3851_v11  ;;  %v2249_v36 = vrot.slane %v2230_v24, 4 }
 0x2fe   :  { %v2205_v37 = vrot.slane %v2204_v27, 2  ;;  %v2232_v38 = vadd.f32 %v2231_v28, %v2227_v7  ;;  %v2217_v39 = vrot.slane %v2216_v29, 2  ;;  %v2244_v40 = vadd.f32 %v2243_v30, %v2229_v14 }
 0x2ff   :  { %v2211_v41 = vrot.slane %v2210_v33, 2  ;;  %v2238_v42 = vadd.f32 %v2237_v34, %v2228_v19  ;;  %v2223_v43 = vrot.slane %v2222_v35, 2  ;;  %v2250_v44 = vadd.f32 %v2249_v36, %v2230_v24 }
 0x300   :  { %v2206_v46 = vadd.f32 %v2205_v37, %v2204_v27  ;;  %v2233_v47 = vrot.slane %v2232_v38, 2  ;;  %v2218_v48 = vadd.f32 %v2217_v39, %v2216_v29  ;;  %v2245_v23 = vrot.slane %v2244_v40, 2 }
 0x301   :  { %v2212_v49 = vadd.f32 %v2211_v41, %v2210_v33  ;;  %v2239_v50 = vrot.slane %v2238_v42, 2  ;;  %v2224_v51 = vadd.f32 %v2223_v43, %v2222_v35  ;;  %v2251_v52 = vrot.slane %v2250_v44, 2 }
 0x302   :  { %v2207_v53 = vrot.slane %v2206_v46, 1  ;;  %v2234_v55 = vadd.f32 %v2233_v47, %v2232_v38  ;;  %v2219_v59 = vrot.slane %v2218_v48, 1  ;;  %v2246_v60 = vadd.f32 %v2245_v23, %v2244_v40 }
 0x303   :  { %v2213_v61 = vrot.slane %v2212_v49, 1  ;;  %v2240_v62 = vadd.f32 %v2239_v50, %v2238_v42  ;;  %v2225_v63 = vrot.slane %v2224_v51, 1  ;;  %v2252_v0 = vadd.f32 %v2251_v52, %v2250_v44 }
 0x304   :  { %v2208_v1 = vadd.f32 %v2207_v53, %v2206_v46  ;;  %v2235_v2 = vrot.slane %v2234_v55, 1  ;;  %v2220_v3 = vadd.f32 %v2219_v59, %v2218_v48  ;;  %v2247_v4 = vrot.slane %v2246_v60, 1 }
 0x305   :  { %v2214_v5 = vadd.f32 %v2213_v61, %v2212_v49  ;;  %v2241_v6 = vrot.slane %v2240_v62, 1  ;;  %v2226_v8 = vadd.f32 %v2225_v63, %v2224_v51  ;;  %v2253_v10 = vrot.slane %v2252_v0, 1  ;;  %v2201_v51 = vld [vmem:[%s3898_s5] sm:$0xf] }
 0x306   :  { %v2236_v12 = vadd.f32 %v2235_v2, %v2234_v55  ;;  %v2255_v16 = vmul.f32 0.125, %v2208_v1  ;;  %v2248_v17 = vadd.f32 %v2247_v4, %v2246_v60  ;;  %v2257_v21 = vmul.f32 0.125, %v2220_v3 }
 0x307   :  { %v2242_v7 = vadd.f32 %v2241_v6, %v2240_v62  ;;  %v2256_v20 = vmul.f32 0.125, %v2214_v5  ;;  %v2254_v14 = vadd.f32 %v2253_v10, %v2252_v0  ;;  %v2258_v13 = vmul.f32 0.125, %v2226_v8 }
 0x308   :  { %v2259_v19 = vmul.f32 0.125, %v2236_v12  ;;  %v2263_v22 = vmul.f32 %v2255_v16, %v2255_v16  ;;  %v2261_v24 = vmul.f32 0.125, %v2248_v17  ;;  %v2265_v25 = vmul.f32 %v2257_v21, %v2257_v21 }
 0x309   :  { %v2260_v26 = vmul.f32 0.125, %v2242_v7  ;;  %v2264_v27 = vmul.f32 %v2256_v20, %v2256_v20  ;;  %v2262_v28 = vmul.f32 0.125, %v2254_v14  ;;  %v2266_v29 = vmul.f32 %v2258_v13, %v2258_v13 }
 0x30a   :  { %v2267_v30 = vsub.f32 %v2259_v19, %v2263_v22  ;;  %v2269_v31 = vsub.f32 %v2261_v24, %v2265_v25 }
 0x30b   :  { %v2268_v32 = vsub.f32 %v2260_v26, %v2264_v27  ;;  %v2270_v33 = vsub.f32 %v2262_v28, %v2266_v29 }
 0x30c   :  { %v2271_v34 = vmax.f32 %v2267_v30, 0.0  ;;  %v2273_v35 = vmax.f32 %v2269_v31, 0.0 }
 0x30d   :  { %v2272_v36 = vmax.f32 %v2268_v32, 0.0  ;;  %v2274_v37 = vmax.f32 %v2270_v33, 0.0  ;;  %v3022_v32 = vld [vmem:[%s3901_s8] ss:$0 sm:$0xff] }
 0x30e   :  { %v2275_v38 = vadd.f32 1e-05, %v2271_v34  ;;  %v2277_v39 = vadd.f32 1e-05, %v2273_v35 }
 0x30f   :  { %v2276_v40 = vadd.f32 1e-05, %v2272_v36  ;;  %v2278_v41 = vadd.f32 1e-05, %v2274_v37 }
 0x310   :  { %3553 = vrsqrt.f32 %v2275_v38 }
 0x311   :  { %3555 = vrsqrt.f32 %v2277_v39 }
 0x312   :  { %3557 = vrsqrt.f32 %v2276_v40 }
 0x313   :  { %3559 = vrsqrt.f32 %v2278_v41 }
 0x31a   :  { %v3554_v42 = vpop.eup %3553 }
 0x31b   :  { %v3556_v43 = vpop.eup %3555 }
 0x31c   :  { %v3558_v44 = vpop.eup %3557 }
 0x31d   :  { %v3560_v46 = vpop.eup %3559  ;;  %v2287_v47 = vcombine.low %v3554_v42, %v3558_v44 }
 0x31e   :  { %v2288_v48 = vcombine.low %v3556_v43, %v3560_v46 }
 0x31f   :  { %v2295_v23 = vrot.slane %v2287_v47, %v3801_v45 }
 0x320   :  { %v2302_v49 = vrot.slane %v2288_v48, %v3801_v45 }
 0x322   :  { %v2303_v50 = vcombine.low %v2295_v23, %v2302_v49 }
 0x324   :  { %v2310_v52 = vrot.slane %v2303_v50, %v3801_v45 }
 0x326   :  { %v2312_v53 = vmul.f32 %v2310_v52, %v2201_v51 }
 0x328   :  { %v2325_v55 = vrot.slane %v2312_v53, %v3808_v54  ;;  %v2329_v59 = vrot.slane %v2312_v53, %v3811_v56  ;;  %v2317_v60 = vrot.slane %v2312_v53, %v3813_v57  ;;  %v2321_v61 = vrot.slane %v2312_v53, %v3815_v58 }
 0x32a   :  { %v2336_v62 = vmul.f32 %v2325_v55, %v2257_v21  ;;  %v2337_v63 = vmul.f32 %v2329_v59, %v2258_v13  ;;  %v2371_v0 = vmul.f32 %v2329_v59, %v3851_v11  ;;  %v2334_v1 = vmul.f32 %v2317_v60, %v2255_v16  ;;  %v2202_v21 = vld [vmem:[%s3899_s6] sm:$0xf] }
 0x32b   :  { %v2335_v2 = vmul.f32 %v2321_v61, %v2256_v20  ;;  %v2369_v3 = vmul.f32 %v2321_v61, %v3849_v15  ;;  %v2368_v4 = vmul.f32 %v2317_v60, %v3839_v18  ;;  %v2370_v5 = vmul.f32 %v2325_v55, %v3841_v9 }
 0x32c   :  { %v2343_v6 = vcombine.low %v2336_v62, %v2337_v63 }
 0x32d   :  { %v2342_v8 = vcombine.low %v2334_v1, %v2335_v2 }
 0x32e   :  { %v2357_v10 = vrot.slane %v2343_v6, %v3801_v45 }
 0x32f   :  { %v2350_v12 = vrot.slane %v2342_v8, %v3801_v45 }
 0x331   :  { %v2358_v17 = vcombine.low %v2350_v12, %v2357_v10 }
 0x333   :  { %v2365_v11 = vrot.slane %v2358_v17, %v3801_v45 }
 0x335   :  { %v2367_v16 = vsub.f32 %v2202_v21, %v2365_v11 }
 0x337   :  { %v2380_v15 = vrot.slane %v2367_v16, %v3815_v58  ;;  %v2388_v18 = vrot.slane %v2367_v16, %v3811_v56  ;;  %v2376_v9 = vrot.slane %v2367_v16, %v3813_v57  ;;  %v2384_v7 = vrot.slane %v2367_v16, %v3808_v54 }
 0x339   :  { %v2394_v20 = vadd.f32 %v2380_v15, %v2369_v3  ;;  %v2396_v14 = vadd.f32 %v2388_v18, %v2371_v0  ;;  %v2393_v13 = vadd.f32 %v2376_v9, %v2368_v4  ;;  %v2395_v19 = vadd.f32 %v2384_v7, %v2370_v5 }
 0x33b   :  { %v2398_v22 = vmul.f32 0.01, %v2394_v20  ;;  %v2400_v24 = vmul.f32 0.01, %v2396_v14  ;;  %v2397_v25 = vmul.f32 0.01, %v2393_v13 }
 0x33c   :  { %v2399_v26 = vmul.f32 0.01, %v2395_v19 }
 0x33d   :  { %v2402_v27 = vmax.f32 %v2394_v20, %v2398_v22  ;;  %v2404_v28 = vmax.f32 %v2396_v14, %v2400_v24  ;;  %v2401_v45 = vmax.f32 %v2393_v13, %v2397_v25 }
 0x33e   :  { %v2403_v29 = vmax.f32 %v2395_v19, %v2399_v26 }
 0x33f   :  { %v2406_v30 = vpack.c.bf16 %v2402_v27, %v2402_v27  ;;  %v2408_v58 = vpack.c.bf16 %v2404_v28, %v2404_v28  ;;  %v2405_v31 = vpack.c.bf16 %v2401_v45, %v2401_v45 }
 0x340   :  { %v2407_v56 = vpack.c.bf16 %v2403_v29, %v2403_v29 }
 0x341   :  { %2704 = vmatprep.mubr.bf16.mxu0 %v2406_v30  ;;  %2744 = vmatprep.mubr.bf16.mxu1 %v2408_v58 }
 0x342   :  { %2705 = vmatmul.mubr.bf16.vlgmr.msra.gmra.mrb[8].mxu0 %v2405_v31  ;;  %2745 = vmatmul.mubr.bf16.vlgmr.msra.gmra.mrb[8].mxu1 %v2407_v56 }
 0x415   :  { %v3073_v54 = vpop.f32.mrb[8].mxu0  ;;  %v3095_v57 = vpop.f32.mrb[8].mxu1 }
 0x416   :  { %v3074_v33 = vpop.f32.mrb[9].mxu0  ;;  %v3096_v34 = vpop.f32.mrb[9].mxu1 }
 0x417   :  { %v3075_v35 = vadd.f32 %v3074_v33, %v3073_v54  ;;  %v3097_v36 = vadd.f32 %v3096_v34, %v3095_v57  ;;  %v3076_v37 = vpop.f32.mrb[10].mxu0  ;;  %v3098_v38 = vpop.f32.mrb[10].mxu1 }
 0x418   :  { %v3077_v39 = vpop.f32.mrb[11].mxu0  ;;  %v3099_v40 = vpop.f32.mrb[11].mxu1 }
 0x419   :  { %v2707_v41 = vadd.f32 %v3075_v35, %v3022_v32 }
 0x41b   :  { %v2747_v42 = vadd.f32 %v3097_v36, %v2707_v41 }
 0x41d   :  { %2752 = vst [vmem:[%s3902_s9] sm:$0xff] %v2747_v42 }
 0x41e   :  { %2757 = vsyncpa [#allocation4], 1 }
 0x41f   :  { %2758 = vsyncpa [#allocation6], 1 }
 0x420   :  { %2759 = vsyncpa [#allocation9], 1 }

</bundles_post_ra>
